<compile_context>
chip_gen: v7x
topology: tpu7x:2x2x1
jax: 0.10.0
libtpu: 0.0.40
codegen_flags: <defaults>
</compile_context>

<pallas_src>
import math
import jax
import jax.numpy as jnp
import numpy as np
from jax import lax
from jax.experimental import pallas as pl
from jax.experimental.pallas import tpu as pltpu

# -------- small config consistent with VQTransformerConfig semantics --------
B = 2            # batch
S = 16           # sequence length (<= max_position_embeddings)
D = 128          # d_model
H = 4            # n_heads
HD = D // H      # head_dim
DFF = 4 * D      # MLP hidden
EPS = 1e-5       # nn.LayerNorm default eps

BATCH_BLOCK = B  # full batch in one grid step on all of v5e / v6e / v7x


def transformer_block_kernel(x_ref,
                             ln1_g_ref, ln1_b_ref,
                             wqkv_ref, bqkv_ref,   # (D, 3D) bf16, (1, 3D) f32
                             wo_ref, bo_ref,       # (D, D)  bf16, (1, D)  f32
                             ln2_g_ref, ln2_b_ref,
                             w1_ref, b1_ref,       # (D, DFF) bf16, (1, DFF) f32
                             w2_ref, b2_ref,       # (DFF, D) bf16, (1, D)  f32
                             o_ref):
    bb, s, d = x_ref.shape
    n = bb * s
    x = x_ref[...].reshape(n, d)                       # (N, D) f32

    # ---------------- LayerNorm 1 (f32, single-pass variance) ----------------
    mu = jnp.mean(x, axis=-1, keepdims=True)
    var = jnp.mean(x * x, axis=-1, keepdims=True) - mu * mu
    a = (x - mu) * lax.rsqrt(var + EPS) * ln1_g_ref[0] + ln1_b_ref[0]

    # ---------------- QKV projection: one lane-dense bf16 matmul ----------------
    # Q columns of wqkv / bqkv already carry the 1/sqrt(HD) scale (host-side).
    qkv = jnp.dot(a.astype(jnp.bfloat16), wqkv_ref[...],
                  preferred_element_type=jnp.float32) + bqkv_ref[0]   # (N, 3D) f32

    # ---------------- Split heads into one combined batch of bb*H ----------------
    def split_heads(z2d):                              # (N, D) f32 -> (H*bb, S, HD) bf16
        parts = [z2d[:, h * HD:(h + 1) * HD].reshape(bb, s, HD) for h in range(H)]
        return jnp.concatenate(parts, axis=0).astype(jnp.bfloat16)

    q = split_heads(qkv[:, :D])
    k = split_heads(qkv[:, D:2 * D])
    v = split_heads(qkv[:, 2 * D:3 * D])

    # ---------------- Attention: batched over all heads at once ----------------
    sc = jnp.einsum('bqd,bkd->bqk', q, k,
                    preferred_element_type=jnp.float32)        # (H*bb, S, S) f32

    row = lax.broadcasted_iota(jnp.int32, (s, s), 0)
    col = lax.broadcasted_iota(jnp.int32, (s, s), 1)
    causal_bias = jnp.where(row >= col, 0.0, -1e30).astype(jnp.float32)
    sc = sc + causal_bias[None]

    sc = sc - jnp.max(sc, axis=-1, keepdims=True)
    p = jnp.exp(sc)
    inv = pl.reciprocal(jnp.sum(p, axis=-1, keepdims=True), approx=True)
    p = (p * inv).astype(jnp.bfloat16)

    oh = jnp.einsum('bqk,bkd->bqd', p, v,
                    preferred_element_type=jnp.float32)        # (H*bb, S, HD) f32

    # ---------------- Merge heads + output projection (one matmul) ----------------
    merged = jnp.concatenate(
        [oh[h * bb:(h + 1) * bb].reshape(n, HD) for h in range(H)], axis=-1)  # (N, D)
    attn = jnp.dot(merged.astype(jnp.bfloat16), wo_ref[...],
                   preferred_element_type=jnp.float32) + bo_ref[0]

    # residual 1 (dropout1 is identity in eval mode)
    x1 = x + attn

    # ---------------- LayerNorm 2 ----------------
    mu2 = jnp.mean(x1, axis=-1, keepdims=True)
    var2 = jnp.mean(x1 * x1, axis=-1, keepdims=True) - mu2 * mu2
    m = (x1 - mu2) * lax.rsqrt(var2 + EPS) * ln2_g_ref[0] + ln2_b_ref[0]

    # ---------------- MLP ----------------
    h1 = jnp.dot(m.astype(jnp.bfloat16), w1_ref[...],
                 preferred_element_type=jnp.float32) + b1_ref[0]
    # exact (erf-based) GELU, matching torch.nn.GELU() default
    h1 = 0.5 * h1 * (1.0 + lax.erf(h1 * (1.0 / math.sqrt(2.0))))
    mlp = jnp.dot(h1.astype(jnp.bfloat16), w2_ref[...],
                  preferred_element_type=jnp.float32) + b2_ref[0]

    # residual 2 (dropout2 is identity in eval mode)
    o_ref[...] = (x1 + mlp).reshape(bb, s, d)


def prep_params(params):
    """Host-side (zero kernel cost) prep: fold 1/sqrt(HD) into Q, cast weights to bf16."""
    (ln1_g, ln1_b, wqkv, bqkv, wo, bo, ln2_g, ln2_b, w1, b1, w2, b2) = params
    scale = 1.0 / math.sqrt(HD)
    col_scale = jnp.concatenate(
        [jnp.full((D,), scale, jnp.float32), jnp.ones((2 * D,), jnp.float32)])
    wqkv_s = (wqkv * col_scale[None, :]).astype(jnp.bfloat16)
    bqkv_s = bqkv * col_scale[None, :]           # biases stay f32 (added post-MXU)
    return [ln1_g, ln1_b,
            wqkv_s, bqkv_s,
            wo.astype(jnp.bfloat16), bo,
            ln2_g, ln2_b,
            w1.astype(jnp.bfloat16), b1,
            w2.astype(jnp.bfloat16), b2]


def transformer_block(x, raw_params):
    b, s, d = x.shape
    params = prep_params(raw_params)

    def full_spec(arr):
        nd = arr.ndim
        return pl.BlockSpec(arr.shape, lambda i, _nd=nd: (0,) * _nd)

    in_specs = [pl.BlockSpec((BATCH_BLOCK, s, d), lambda i: (i, 0, 0))] + \
               [full_spec(p) for p in params]

    # Advisory cost estimate so XLA schedules this tiny call sensibly.
    n_rows = b * s
    flops = (2 * n_rows * D * 3 * D            # QKV
             + 2 * b * H * S * S * HD * 2      # scores + p@v
             + 2 * n_rows * D * D              # out proj
             + 2 * n_rows * D * DFF * 2)       # MLP
    transcendentals = b * H * S * S + n_rows * DFF            # exp + erf
    bytes_accessed = (2 * (D * 3 * D + D * D + 2 * D * DFF)   # bf16 weights
                      + 4 * (2 * n_rows * D                   # x in/out (f32)
                             + 3 * D + D + DFF + D            # biases (f32)
                             + 4 * D))                        # LN params (f32)

    return pl.pallas_call(
        transformer_block_kernel,
        out_shape=jax.ShapeDtypeStruct((b, s, d), x.dtype),
        grid=(b // BATCH_BLOCK,),
        in_specs=in_specs,
        out_specs=pl.BlockSpec((BATCH_BLOCK, s, d), lambda i: (i, 0, 0)),
        input_output_aliases={0: 0},           # reuse x's HBM buffer for the output
        compiler_params=pltpu.CompilerParams(dimension_semantics=("parallel",)),
        cost_estimate=pl.CostEstimate(flops=flops,
                                      transcendentals=transcendentals,
                                      bytes_accessed=bytes_accessed),
    )(x, *params)


# -------------------------- pure-JAX reference (PyTorch-faithful) --------------------------
def reference_block(x, params):
    (ln1_g, ln1_b, wqkv, bqkv, wo, bo, ln2_g, ln2_b, w1, b1, w2, b2) = params

    def ln(z, g, bias):
        mu = z.mean(-1, keepdims=True)
        var = ((z - mu) ** 2).mean(-1, keepdims=True)
        return (z - mu) / jnp.sqrt(var + EPS) * g + bias

    a = ln(x, ln1_g, ln1_b)
    qkv = a @ wqkv + bqkv
    q, k, v = jnp.split(qkv, 3, axis=-1)
    q = q.reshape(B, S, H, HD).transpose(0, 2, 1, 3)
    k = k.reshape(B, S, H, HD).transpose(0, 2, 1, 3)
    v = v.reshape(B, S, H, HD).transpose(0, 2, 1, 3)
    scores = jnp.einsum('bhqd,bhkd->bhqk', q, k) / math.sqrt(HD)
    mask = jnp.tril(jnp.ones((S, S), dtype=bool))
    scores = jnp.where(mask[None, None], scores, -jnp.inf)
    w = jax.nn.softmax(scores, axis=-1)
    out = jnp.einsum('bhqk,bhkd->bhqd', w, v)
    out = out.transpose(0, 2, 1, 3).reshape(B, S, D)
    out = out @ wo + bo
    x1 = x + out
    m = ln(x1, ln2_g, ln2_b)
    h1 = m @ w1 + b1
    h1 = 0.5 * h1 * (1.0 + lax.erf(h1 / math.sqrt(2.0)))
    return x1 + (h1 @ w2 + b2)


def make_params(key):
    ks = jax.random.split(key, 8)

    def lin(kw, kb, fan_in, fan_out):
        bound = 1.0 / math.sqrt(fan_in)
        w = jax.random.uniform(kw, (fan_in, fan_out), jnp.float32, -bound, bound)
        bb_ = jax.random.uniform(kb, (1, fan_out), jnp.float32, -bound, bound)
        return w, bb_

    ln1_g = jnp.ones((1, D), jnp.float32)
    ln1_b = jnp.zeros((1, D), jnp.float32)
    ln2_g = jnp.ones((1, D), jnp.float32)
    ln2_b = jnp.zeros((1, D), jnp.float32)
    wqkv, bqkv = lin(ks[0], ks[1], D, 3 * D)
    wo, bo = lin(ks[2], ks[3], D, D)
    w1, b1 = lin(ks[4], ks[5], D, DFF)
    w2, b2 = lin(ks[6], ks[7], DFF, D)
    return [ln1_g, ln1_b, wqkv, bqkv, wo, bo, ln2_g, ln2_b, w1, b1, w2, b2]


if __name__ == "__main__":
    key = jax.random.PRNGKey(0)
    kx, kp = jax.random.split(key)
    x = jax.random.normal(kx, (B, S, D), jnp.float32)
    raw_params = make_params(kp)

    # f32 reference first (x is aliased to the kernel output buffer inside the call).
    ref = reference_block(x, raw_params)

    out = transformer_block(x, raw_params)
    out = jax.block_until_ready(out)

    # Tolerance reflects bf16 MXU operands (f32 accumulation) and the EUP
    # approximate reciprocal used for the softmax normalization.
    np.testing.assert_allclose(np.asarray(out), np.asarray(ref), rtol=2e-2, atol=2e-2)

    print("KERNEL_OK")
</pallas_src>

<mosaic_0001>
module attributes {stable_mosaic.version = 11 : i64} {
  func.func @transformer_block_kernel(%arg0: i32, %arg1: memref<2x16x128xf32, #tpu.memory_space<vmem>>, %arg2: memref<1x128xf32, #tpu.memory_space<vmem>>, %arg3: memref<1x128xf32, #tpu.memory_space<vmem>>, %arg4: memref<128x384xbf16, #tpu.memory_space<vmem>>, %arg5: memref<1x384xf32, #tpu.memory_space<vmem>>, %arg6: memref<128x128xbf16, #tpu.memory_space<vmem>>, %arg7: memref<1x128xf32, #tpu.memory_space<vmem>>, %arg8: memref<1x128xf32, #tpu.memory_space<vmem>>, %arg9: memref<1x128xf32, #tpu.memory_space<vmem>>, %arg10: memref<128x512xbf16, #tpu.memory_space<vmem>>, %arg11: memref<1x512xf32, #tpu.memory_space<vmem>>, %arg12: memref<512x128xbf16, #tpu.memory_space<vmem>>, %arg13: memref<1x128xf32, #tpu.memory_space<vmem>>, %arg14: memref<2x16x128xf32, #tpu.memory_space<vmem>>) attributes {dimension_semantics = [#tpu.dimension_semantics<parallel>], iteration_bounds = array<i64: 1>, scalar_prefetch = 0 : i64, scratch_operands = 0 : i64, tpu.core_type = #tpu.core_type<tc>, window_params = [{transform_indices = @transform_0, window_bounds = array<i64: 2, 16, 128>}, {pipeline_mode = #tpu.pipeline_mode<synchronous>, transform_indices = @transform_1, window_bounds = array<i64: 1, 128>}, {pipeline_mode = #tpu.pipeline_mode<synchronous>, transform_indices = @transform_2, window_bounds = array<i64: 1, 128>}, {pipeline_mode = #tpu.pipeline_mode<synchronous>, transform_indices = @transform_3, window_bounds = array<i64: 128, 384>}, {pipeline_mode = #tpu.pipeline_mode<synchronous>, transform_indices = @transform_4, window_bounds = array<i64: 1, 384>}, {pipeline_mode = #tpu.pipeline_mode<synchronous>, transform_indices = @transform_5, window_bounds = array<i64: 128, 128>}, {pipeline_mode = #tpu.pipeline_mode<synchronous>, transform_indices = @transform_6, window_bounds = array<i64: 1, 128>}, {pipeline_mode = #tpu.pipeline_mode<synchronous>, transform_indices = @transform_7, window_bounds = array<i64: 1, 128>}, {pipeline_mode = #tpu.pipeline_mode<synchronous>, transform_indices = @transform_8, window_bounds = array<i64: 1, 128>}, {pipeline_mode = #tpu.pipeline_mode<synchronous>, transform_indices = @transform_9, window_bounds = array<i64: 128, 512>}, {pipeline_mode = #tpu.pipeline_mode<synchronous>, transform_indices = @transform_10, window_bounds = array<i64: 1, 512>}, {pipeline_mode = #tpu.pipeline_mode<synchronous>, transform_indices = @transform_11, window_bounds = array<i64: 512, 128>}, {pipeline_mode = #tpu.pipeline_mode<synchronous>, transform_indices = @transform_12, window_bounds = array<i64: 1, 128>}, {transform_indices = @transform_13, window_bounds = array<i64: 2, 16, 128>}]} {
    %c0 = arith.constant 0 : index
    %c0_0 = arith.constant 0 : index
    %c0_1 = arith.constant 0 : index
    %0 = vector.load %arg1[%c0, %c0_0, %c0_1] : memref<2x16x128xf32, #tpu.memory_space<vmem>>, vector<2x16x128xf32>
    %1 = vector.shape_cast %0 : vector<2x16x128xf32> to vector<32x128xf32>
    %cst = arith.constant dense<0.000000e+00> : vector<32xf32>
    %2 = vector.multi_reduction <add>, %1, %cst [1] : vector<32x128xf32> to vector<32xf32>
    %3 = vector.shape_cast %2 : vector<32xf32> to vector<32x1xf32>
    %cst_2 = arith.constant 1.280000e+02 : f32
    %4 = vector.broadcast %cst_2 : f32 to vector<32x1xf32>
    %5 = arith.divf %3, %4 : vector<32x1xf32>
    %6 = arith.mulf %1, %1 : vector<32x128xf32>
    %cst_3 = arith.constant dense<0.000000e+00> : vector<32xf32>
    %7 = vector.multi_reduction <add>, %6, %cst_3 [1] : vector<32x128xf32> to vector<32xf32>
    %8 = vector.shape_cast %7 : vector<32xf32> to vector<32x1xf32>
    %cst_4 = arith.constant 1.280000e+02 : f32
    %9 = vector.broadcast %cst_4 : f32 to vector<32x1xf32>
    %10 = arith.divf %8, %9 : vector<32x1xf32>
    %11 = arith.mulf %5, %5 : vector<32x1xf32>
    %12 = arith.subf %10, %11 : vector<32x1xf32>
    %13 = vector.broadcast %5 : vector<32x1xf32> to vector<32x128xf32>
    %14 = arith.subf %1, %13 : vector<32x128xf32>
    %cst_5 = arith.constant 9.99999974E-6 : f32
    %15 = vector.broadcast %cst_5 : f32 to vector<32x1xf32>
    %16 = arith.addf %12, %15 : vector<32x1xf32>
    %17 = math.rsqrt %16 : vector<32x1xf32>
    %18 = vector.broadcast %17 : vector<32x1xf32> to vector<32x128xf32>
    %19 = arith.mulf %14, %18 : vector<32x128xf32>
    %c0_6 = arith.constant 0 : index
    %c0_7 = arith.constant 0 : index
    %20 = vector.load %arg2[%c0_6, %c0_7] : memref<1x128xf32, #tpu.memory_space<vmem>>, vector<1x128xf32>
    %21 = vector.shape_cast %20 : vector<1x128xf32> to vector<128xf32>
    %22 = vector.shape_cast %21 : vector<128xf32> to vector<1x128xf32>
    %23 = vector.broadcast %22 : vector<1x128xf32> to vector<32x128xf32>
    %24 = arith.mulf %19, %23 : vector<32x128xf32>
    %c0_8 = arith.constant 0 : index
    %c0_9 = arith.constant 0 : index
    %25 = vector.load %arg3[%c0_8, %c0_9] : memref<1x128xf32, #tpu.memory_space<vmem>>, vector<1x128xf32>
    %26 = vector.shape_cast %25 : vector<1x128xf32> to vector<128xf32>
    %27 = vector.shape_cast %26 : vector<128xf32> to vector<1x128xf32>
    %28 = vector.broadcast %27 : vector<1x128xf32> to vector<32x128xf32>
    %29 = arith.addf %24, %28 : vector<32x128xf32>
    %30 = arith.truncf %29 : vector<32x128xf32> to vector<32x128xbf16>
    %c0_10 = arith.constant 0 : index
    %c0_11 = arith.constant 0 : index
    %31 = vector.load %arg4[%c0_10, %c0_11] : memref<128x384xbf16, #tpu.memory_space<vmem>>, vector<128x384xbf16>
    %cst_12 = arith.constant dense<0.000000e+00> : vector<32x384xf32>
    %32 = tpu.matmul %30, %31, %cst_12 {dimension_numbers = #tpu.dot_dimension_numbers<[1], [0], [0], [1], [0, 0, 1, 1], [], []>} : vector<32x128xbf16>, vector<128x384xbf16>, vector<32x384xf32> -> vector<32x384xf32>
    %c0_13 = arith.constant 0 : index
    %c0_14 = arith.constant 0 : index
    %33 = vector.load %arg5[%c0_13, %c0_14] : memref<1x384xf32, #tpu.memory_space<vmem>>, vector<1x384xf32>
    %34 = vector.shape_cast %33 : vector<1x384xf32> to vector<384xf32>
    %35 = vector.shape_cast %34 : vector<384xf32> to vector<1x384xf32>
    %36 = vector.broadcast %35 : vector<1x384xf32> to vector<32x384xf32>
    %37 = arith.addf %32, %36 : vector<32x384xf32>
    %38 = vector.extract_strided_slice %37 {offsets = [0, 0], sizes = [32, 128], strides = [1, 1]} : vector<32x384xf32> to vector<32x128xf32>
    %39 = vector.extract_strided_slice %38 {offsets = [0, 0], sizes = [32, 32], strides = [1, 1]} : vector<32x128xf32> to vector<32x32xf32>
    %40 = vector.shape_cast %39 : vector<32x32xf32> to vector<2x16x32xf32>
    %41 = vector.extract_strided_slice %38 {offsets = [0, 32], sizes = [32, 32], strides = [1, 1]} : vector<32x128xf32> to vector<32x32xf32>
    %42 = vector.shape_cast %41 : vector<32x32xf32> to vector<2x16x32xf32>
    %43 = vector.extract_strided_slice %38 {offsets = [0, 64], sizes = [32, 32], strides = [1, 1]} : vector<32x128xf32> to vector<32x32xf32>
    %44 = vector.shape_cast %43 : vector<32x32xf32> to vector<2x16x32xf32>
    %45 = vector.extract_strided_slice %38 {offsets = [0, 96], sizes = [32, 32], strides = [1, 1]} : vector<32x128xf32> to vector<32x32xf32>
    %46 = vector.shape_cast %45 : vector<32x32xf32> to vector<2x16x32xf32>
    %47 = tpu.concatenate %40, %42, %44, %46 in 0 : vector<2x16x32xf32>, vector<2x16x32xf32>, vector<2x16x32xf32>, vector<2x16x32xf32> -> vector<8x16x32xf32>
    %48 = arith.truncf %47 : vector<8x16x32xf32> to vector<8x16x32xbf16>
    %49 = vector.extract_strided_slice %37 {offsets = [0, 128], sizes = [32, 128], strides = [1, 1]} : vector<32x384xf32> to vector<32x128xf32>
    %50 = vector.extract_strided_slice %49 {offsets = [0, 0], sizes = [32, 32], strides = [1, 1]} : vector<32x128xf32> to vector<32x32xf32>
    %51 = vector.shape_cast %50 : vector<32x32xf32> to vector<2x16x32xf32>
    %52 = vector.extract_strided_slice %49 {offsets = [0, 32], sizes = [32, 32], strides = [1, 1]} : vector<32x128xf32> to vector<32x32xf32>
    %53 = vector.shape_cast %52 : vector<32x32xf32> to vector<2x16x32xf32>
    %54 = vector.extract_strided_slice %49 {offsets = [0, 64], sizes = [32, 32], strides = [1, 1]} : vector<32x128xf32> to vector<32x32xf32>
    %55 = vector.shape_cast %54 : vector<32x32xf32> to vector<2x16x32xf32>
    %56 = vector.extract_strided_slice %49 {offsets = [0, 96], sizes = [32, 32], strides = [1, 1]} : vector<32x128xf32> to vector<32x32xf32>
    %57 = vector.shape_cast %56 : vector<32x32xf32> to vector<2x16x32xf32>
    %58 = tpu.concatenate %51, %53, %55, %57 in 0 : vector<2x16x32xf32>, vector<2x16x32xf32>, vector<2x16x32xf32>, vector<2x16x32xf32> -> vector<8x16x32xf32>
    %59 = arith.truncf %58 : vector<8x16x32xf32> to vector<8x16x32xbf16>
    %60 = vector.extract_strided_slice %37 {offsets = [0, 256], sizes = [32, 128], strides = [1, 1]} : vector<32x384xf32> to vector<32x128xf32>
    %61 = vector.extract_strided_slice %60 {offsets = [0, 0], sizes = [32, 32], strides = [1, 1]} : vector<32x128xf32> to vector<32x32xf32>
    %62 = vector.shape_cast %61 : vector<32x32xf32> to vector<2x16x32xf32>
    %63 = vector.extract_strided_slice %60 {offsets = [0, 32], sizes = [32, 32], strides = [1, 1]} : vector<32x128xf32> to vector<32x32xf32>
    %64 = vector.shape_cast %63 : vector<32x32xf32> to vector<2x16x32xf32>
    %65 = vector.extract_strided_slice %60 {offsets = [0, 64], sizes = [32, 32], strides = [1, 1]} : vector<32x128xf32> to vector<32x32xf32>
    %66 = vector.shape_cast %65 : vector<32x32xf32> to vector<2x16x32xf32>
    %67 = vector.extract_strided_slice %60 {offsets = [0, 96], sizes = [32, 32], strides = [1, 1]} : vector<32x128xf32> to vector<32x32xf32>
    %68 = vector.shape_cast %67 : vector<32x32xf32> to vector<2x16x32xf32>
    %69 = tpu.concatenate %62, %64, %66, %68 in 0 : vector<2x16x32xf32>, vector<2x16x32xf32>, vector<2x16x32xf32>, vector<2x16x32xf32> -> vector<8x16x32xf32>
    %70 = arith.truncf %69 : vector<8x16x32xf32> to vector<8x16x32xbf16>
    "tpu.trace_start"() <{level = 10 : i32, message = "bqd,bkd->bqk"}> : () -> ()
    %cst_15 = arith.constant dense<0.000000e+00> : vector<8x16x16xf32>
    %71 = tpu.matmul %48, %59, %cst_15 {dimension_numbers = #tpu.dot_dimension_numbers<[2], [2], [1], [1], [0, 0, 0, 1, 1, 1], [0], [0]>} : vector<8x16x32xbf16>, vector<8x16x32xbf16>, vector<8x16x16xf32> -> vector<8x16x16xf32>
    "tpu.trace_stop"() : () -> ()
    %72 = tpu.iota {dimensions = array<i32: 0>} : vector<16x16xi32>
    %73 = tpu.iota {dimensions = array<i32: 1>} : vector<16x16xi32>
    %74 = arith.cmpi sge, %72, %73 : vector<16x16xi32>
    %cst_16 = arith.constant 0.000000e+00 : f32
    %cst_17 = arith.constant -1.000000e+30 : f32
    %75 = vector.broadcast %cst_16 : f32 to vector<16x16xf32>
    %76 = vector.broadcast %cst_17 : f32 to vector<16x16xf32>
    %77 = arith.select %74, %75, %76 : vector<16x16xi1>, vector<16x16xf32>
    %78 = vector.shape_cast %77 : vector<16x16xf32> to vector<1x16x16xf32>
    %79 = vector.broadcast %78 : vector<1x16x16xf32> to vector<8x16x16xf32>
    %80 = arith.addf %71, %79 : vector<8x16x16xf32>
    %cst_18 = arith.constant dense<0xFF800000> : vector<8x16xf32>
    %81 = vector.multi_reduction <maximumf>, %80, %cst_18 [2] : vector<8x16x16xf32> to vector<8x16xf32>
    %82 = vector.shape_cast %81 : vector<8x16xf32> to vector<8x16x1xf32>
    %83 = vector.broadcast %82 : vector<8x16x1xf32> to vector<8x16x16xf32>
    %84 = arith.subf %80, %83 : vector<8x16x16xf32>
    %85 = math.exp %84 : vector<8x16x16xf32>
    %cst_19 = arith.constant dense<0.000000e+00> : vector<8x16xf32>
    %86 = vector.multi_reduction <add>, %85, %cst_19 [2] : vector<8x16x16xf32> to vector<8x16xf32>
    %87 = vector.shape_cast %86 : vector<8x16xf32> to vector<8x16x1xf32>
    %88 = tpu.reciprocal %87 {approx = true} : vector<8x16x1xf32> -> vector<8x16x1xf32>
    %89 = vector.broadcast %88 : vector<8x16x1xf32> to vector<8x16x16xf32>
    %90 = arith.mulf %85, %89 : vector<8x16x16xf32>
    %91 = arith.truncf %90 : vector<8x16x16xf32> to vector<8x16x16xbf16>
    "tpu.trace_start"() <{level = 10 : i32, message = "bqk,bkd->bqd"}> : () -> ()
    %cst_20 = arith.constant dense<0.000000e+00> : vector<8x16x32xf32>
    %92 = tpu.matmul %91, %70, %cst_20 {dimension_numbers = #tpu.dot_dimension_numbers<[2], [1], [1], [2], [0, 0, 0, 1, 1, 2], [0], [0]>} : vector<8x16x16xbf16>, vector<8x16x32xbf16>, vector<8x16x32xf32> -> vector<8x16x32xf32>
    "tpu.trace_stop"() : () -> ()
    %93 = vector.extract_strided_slice %92 {offsets = [0, 0, 0], sizes = [2, 16, 32], strides = [1, 1, 1]} : vector<8x16x32xf32> to vector<2x16x32xf32>
    %94 = vector.shape_cast %93 : vector<2x16x32xf32> to vector<32x32xf32>
    %95 = vector.extract_strided_slice %92 {offsets = [2, 0, 0], sizes = [2, 16, 32], strides = [1, 1, 1]} : vector<8x16x32xf32> to vector<2x16x32xf32>
    %96 = vector.shape_cast %95 : vector<2x16x32xf32> to vector<32x32xf32>
    %97 = vector.extract_strided_slice %92 {offsets = [4, 0, 0], sizes = [2, 16, 32], strides = [1, 1, 1]} : vector<8x16x32xf32> to vector<2x16x32xf32>
    %98 = vector.shape_cast %97 : vector<2x16x32xf32> to vector<32x32xf32>
    %99 = vector.extract_strided_slice %92 {offsets = [6, 0, 0], sizes = [2, 16, 32], strides = [1, 1, 1]} : vector<8x16x32xf32> to vector<2x16x32xf32>
    %100 = vector.shape_cast %99 : vector<2x16x32xf32> to vector<32x32xf32>
    %101 = tpu.concatenate %94, %96, %98, %100 in 1 : vector<32x32xf32>, vector<32x32xf32>, vector<32x32xf32>, vector<32x32xf32> -> vector<32x128xf32>
    %102 = arith.truncf %101 : vector<32x128xf32> to vector<32x128xbf16>
    %c0_21 = arith.constant 0 : index
    %c0_22 = arith.constant 0 : index
    %103 = vector.load %arg6[%c0_21, %c0_22] : memref<128x128xbf16, #tpu.memory_space<vmem>>, vector<128x128xbf16>
    %cst_23 = arith.constant dense<0.000000e+00> : vector<32x128xf32>
    %104 = tpu.matmul %102, %103, %cst_23 {dimension_numbers = #tpu.dot_dimension_numbers<[1], [0], [0], [1], [0, 0, 1, 1], [], []>} : vector<32x128xbf16>, vector<128x128xbf16>, vector<32x128xf32> -> vector<32x128xf32>
    %c0_24 = arith.constant 0 : index
    %c0_25 = arith.constant 0 : index
    %105 = vector.load %arg7[%c0_24, %c0_25] : memref<1x128xf32, #tpu.memory_space<vmem>>, vector<1x128xf32>
    %106 = vector.shape_cast %105 : vector<1x128xf32> to vector<128xf32>
    %107 = vector.shape_cast %106 : vector<128xf32> to vector<1x128xf32>
    %108 = vector.broadcast %107 : vector<1x128xf32> to vector<32x128xf32>
    %109 = arith.addf %104, %108 : vector<32x128xf32>
    %110 = arith.addf %1, %109 : vector<32x128xf32>
    %cst_26 = arith.constant dense<0.000000e+00> : vector<32xf32>
    %111 = vector.multi_reduction <add>, %110, %cst_26 [1] : vector<32x128xf32> to vector<32xf32>
    %112 = vector.shape_cast %111 : vector<32xf32> to vector<32x1xf32>
    %cst_27 = arith.constant 1.280000e+02 : f32
    %113 = vector.broadcast %cst_27 : f32 to vector<32x1xf32>
    %114 = arith.divf %112, %113 : vector<32x1xf32>
    %115 = arith.mulf %110, %110 : vector<32x128xf32>
    %cst_28 = arith.constant dense<0.000000e+00> : vector<32xf32>
    %116 = vector.multi_reduction <add>, %115, %cst_28 [1] : vector<32x128xf32> to vector<32xf32>
    %117 = vector.shape_cast %116 : vector<32xf32> to vector<32x1xf32>
    %cst_29 = arith.constant 1.280000e+02 : f32
    %118 = vector.broadcast %cst_29 : f32 to vector<32x1xf32>
    %119 = arith.divf %117, %118 : vector<32x1xf32>
    %120 = arith.mulf %114, %114 : vector<32x1xf32>
    %121 = arith.subf %119, %120 : vector<32x1xf32>
    %122 = vector.broadcast %114 : vector<32x1xf32> to vector<32x128xf32>
    %123 = arith.subf %110, %122 : vector<32x128xf32>
    %cst_30 = arith.constant 9.99999974E-6 : f32
    %124 = vector.broadcast %cst_30 : f32 to vector<32x1xf32>
    %125 = arith.addf %121, %124 : vector<32x1xf32>
    %126 = math.rsqrt %125 : vector<32x1xf32>
    %127 = vector.broadcast %126 : vector<32x1xf32> to vector<32x128xf32>
    %128 = arith.mulf %123, %127 : vector<32x128xf32>
    %c0_31 = arith.constant 0 : index
    %c0_32 = arith.constant 0 : index
    %129 = vector.load %arg8[%c0_31, %c0_32] : memref<1x128xf32, #tpu.memory_space<vmem>>, vector<1x128xf32>
    %130 = vector.shape_cast %129 : vector<1x128xf32> to vector<128xf32>
    %131 = vector.shape_cast %130 : vector<128xf32> to vector<1x128xf32>
    %132 = vector.broadcast %131 : vector<1x128xf32> to vector<32x128xf32>
    %133 = arith.mulf %128, %132 : vector<32x128xf32>
    %c0_33 = arith.constant 0 : index
    %c0_34 = arith.constant 0 : index
    %134 = vector.load %arg9[%c0_33, %c0_34] : memref<1x128xf32, #tpu.memory_space<vmem>>, vector<1x128xf32>
    %135 = vector.shape_cast %134 : vector<1x128xf32> to vector<128xf32>
    %136 = vector.shape_cast %135 : vector<128xf32> to vector<1x128xf32>
    %137 = vector.broadcast %136 : vector<1x128xf32> to vector<32x128xf32>
    %138 = arith.addf %133, %137 : vector<32x128xf32>
    %139 = arith.truncf %138 : vector<32x128xf32> to vector<32x128xbf16>
    %c0_35 = arith.constant 0 : index
    %c0_36 = arith.constant 0 : index
    %140 = vector.load %arg10[%c0_35, %c0_36] : memref<128x512xbf16, #tpu.memory_space<vmem>>, vector<128x512xbf16>
    %cst_37 = arith.constant dense<0.000000e+00> : vector<32x512xf32>
    %141 = tpu.matmul %139, %140, %cst_37 {dimension_numbers = #tpu.dot_dimension_numbers<[1], [0], [0], [1], [0, 0, 1, 1], [], []>} : vector<32x128xbf16>, vector<128x512xbf16>, vector<32x512xf32> -> vector<32x512xf32>
    %c0_38 = arith.constant 0 : index
    %c0_39 = arith.constant 0 : index
    %142 = vector.load %arg11[%c0_38, %c0_39] : memref<1x512xf32, #tpu.memory_space<vmem>>, vector<1x512xf32>
    %143 = vector.shape_cast %142 : vector<1x512xf32> to vector<512xf32>
    %144 = vector.shape_cast %143 : vector<512xf32> to vector<1x512xf32>
    %145 = vector.broadcast %144 : vector<1x512xf32> to vector<32x512xf32>
    %146 = arith.addf %141, %145 : vector<32x512xf32>
    %cst_40 = arith.constant 5.000000e-01 : f32
    %147 = vector.broadcast %cst_40 : f32 to vector<32x512xf32>
    %148 = arith.mulf %147, %146 : vector<32x512xf32>
    %cst_41 = arith.constant 0.707106769 : f32
    %149 = vector.broadcast %cst_41 : f32 to vector<32x512xf32>
    %150 = arith.mulf %146, %149 : vector<32x512xf32>
    %151 = math.erf %150 : vector<32x512xf32>
    %cst_42 = arith.constant 1.000000e+00 : f32
    %152 = vector.broadcast %cst_42 : f32 to vector<32x512xf32>
    %153 = arith.addf %152, %151 : vector<32x512xf32>
    %154 = arith.mulf %148, %153 : vector<32x512xf32>
    %155 = arith.truncf %154 : vector<32x512xf32> to vector<32x512xbf16>
    %c0_43 = arith.constant 0 : index
    %c0_44 = arith.constant 0 : index
    %156 = vector.load %arg12[%c0_43, %c0_44] : memref<512x128xbf16, #tpu.memory_space<vmem>>, vector<512x128xbf16>
    %cst_45 = arith.constant dense<0.000000e+00> : vector<32x128xf32>
    %157 = tpu.matmul %155, %156, %cst_45 {dimension_numbers = #tpu.dot_dimension_numbers<[1], [0], [0], [1], [0, 0, 1, 1], [], []>} : vector<32x512xbf16>, vector<512x128xbf16>, vector<32x128xf32> -> vector<32x128xf32>
    %c0_46 = arith.constant 0 : index
    %c0_47 = arith.constant 0 : index
    %158 = vector.load %arg13[%c0_46, %c0_47] : memref<1x128xf32, #tpu.memory_space<vmem>>, vector<1x128xf32>
    %159 = vector.shape_cast %158 : vector<1x128xf32> to vector<128xf32>
    %160 = vector.shape_cast %159 : vector<128xf32> to vector<1x128xf32>
    %161 = vector.broadcast %160 : vector<1x128xf32> to vector<32x128xf32>
    %162 = arith.addf %157, %161 : vector<32x128xf32>
    %163 = arith.addf %110, %162 : vector<32x128xf32>
    %164 = vector.shape_cast %163 : vector<32x128xf32> to vector<2x16x128xf32>
    %c0_48 = arith.constant 0 : index
    %c0_49 = arith.constant 0 : index
    %c0_50 = arith.constant 0 : index
    %165 = vector.load %arg14[%c0_48, %c0_49, %c0_50] : memref<2x16x128xf32, #tpu.memory_space<vmem>>, vector<2x16x128xf32>
    tpu.vector_store %arg14[%c0_48, %c0_49, %c0_50], %164 {strides = array<i32>} : memref<2x16x128xf32, #tpu.memory_space<vmem>>, vector<2x16x128xf32>,
    return
  }
  func.func @transform_0(%arg0: i32) -> (i32, i32, i32) {
    %c0_i32 = arith.constant 0 : i32
    %c0_i32_0 = arith.constant 0 : i32
    %c0_i32_1 = arith.constant 0 : i32
    return %arg0, %c0_i32, %c0_i32_0 : i32, i32, i32
  }
  func.func @transform_1(%arg0: i32) -> (i32, i32) {
    %c0_i32 = arith.constant 0 : i32
    %c0_i32_0 = arith.constant 0 : i32
    %c0_i32_1 = arith.constant 0 : i32
    return %c0_i32, %c0_i32_0 : i32, i32
  }
  func.func @transform_2(%arg0: i32) -> (i32, i32) {
    %c0_i32 = arith.constant 0 : i32
    %c0_i32_0 = arith.constant 0 : i32
    %c0_i32_1 = arith.constant 0 : i32
    return %c0_i32, %c0_i32_0 : i32, i32
  }
  func.func @transform_3(%arg0: i32) -> (i32, i32) {
    %c0_i32 = arith.constant 0 : i32
    %c0_i32_0 = arith.constant 0 : i32
    %c0_i32_1 = arith.constant 0 : i32
    return %c0_i32, %c0_i32_0 : i32, i32
  }
  func.func @transform_4(%arg0: i32) -> (i32, i32) {
    %c0_i32 = arith.constant 0 : i32
    %c0_i32_0 = arith.constant 0 : i32
    %c0_i32_1 = arith.constant 0 : i32
    return %c0_i32, %c0_i32_0 : i32, i32
  }
  func.func @transform_5(%arg0: i32) -> (i32, i32) {
    %c0_i32 = arith.constant 0 : i32
    %c0_i32_0 = arith.constant 0 : i32
    %c0_i32_1 = arith.constant 0 : i32
    return %c0_i32, %c0_i32_0 : i32, i32
  }
  func.func @transform_6(%arg0: i32) -> (i32, i32) {
    %c0_i32 = arith.constant 0 : i32
    %c0_i32_0 = arith.constant 0 : i32
    %c0_i32_1 = arith.constant 0 : i32
    return %c0_i32, %c0_i32_0 : i32, i32
  }
  func.func @transform_7(%arg0: i32) -> (i32, i32) {
    %c0_i32 = arith.constant 0 : i32
    %c0_i32_0 = arith.constant 0 : i32
    %c0_i32_1 = arith.constant 0 : i32
    return %c0_i32, %c0_i32_0 : i32, i32
  }
  func.func @transform_8(%arg0: i32) -> (i32, i32) {
    %c0_i32 = arith.constant 0 : i32
    %c0_i32_0 = arith.constant 0 : i32
    %c0_i32_1 = arith.constant 0 : i32
    return %c0_i32, %c0_i32_0 : i32, i32
  }
  func.func @transform_9(%arg0: i32) -> (i32, i32) {
    %c0_i32 = arith.constant 0 : i32
    %c0_i32_0 = arith.constant 0 : i32
    %c0_i32_1 = arith.constant 0 : i32
    return %c0_i32, %c0_i32_0 : i32, i32
  }
  func.func @transform_10(%arg0: i32) -> (i32, i32) {
    %c0_i32 = arith.constant 0 : i32
    %c0_i32_0 = arith.constant 0 : i32
    %c0_i32_1 = arith.constant 0 : i32
    return %c0_i32, %c0_i32_0 : i32, i32
  }
  func.func @transform_11(%arg0: i32) -> (i32, i32) {
    %c0_i32 = arith.constant 0 : i32
    %c0_i32_0 = arith.constant 0 : i32
    %c0_i32_1 = arith.constant 0 : i32
    return %c0_i32, %c0_i32_0 : i32, i32
  }
  func.func @transform_12(%arg0: i32) -> (i32, i32) {
    %c0_i32 = arith.constant 0 : i32
    %c0_i32_0 = arith.constant 0 : i32
    %c0_i32_1 = arith.constant 0 : i32
    return %c0_i32, %c0_i32_0 : i32, i32
  }
  func.func @transform_13(%arg0: i32) -> (i32, i32, i32) {
    %c0_i32 = arith.constant 0 : i32
    %c0_i32_0 = arith.constant 0 : i32
    %c0_i32_1 = arith.constant 0 : i32
    return %arg0, %c0_i32, %c0_i32_0 : i32, i32, i32
  }
}

</mosaic_0001>

<bundles_post_ra>
// kernel: tpu_custom_call.1
= control target key start
LH: loop header
LB: loop body
LE: loop exit
PB: predicated region body
PF: predicated region fallthrough
CT: control target
= control target key end

     0   :  { %18 = vsyncpa [#allocation3], 0  ;;  %s4104_s0 = inlined_call_operand.hbm [shape: f32[2,16,128], index: 0, kind: input, shape index: {}, may-alias: {0,13}]   ;;  %s4105_s1 = inlined_call_operand.vmem [shape: f32[1,128], index: 1, kind: input, shape index: {}]   ;;  %s4106_s2 = inlined_call_operand.vmem [shape: f32[1,128], index: 2, kind: input, shape index: {}]   ;;  %s4107_s3 = inlined_call_operand.hbm [shape: bf16[128,384], index: 3, kind: input, shape index: {}]   ;;  %s4108_s4 = inlined_call_operand.vmem [shape: f32[1,384], index: 4, kind: input, shape index: {}]   ;;  %s4109_s5 = inlined_call_operand.vmem [shape: bf16[128,128], index: 5, kind: input, shape index: {}]   ;;  %s4110_s6 = inlined_call_operand.vmem [shape: f32[1,128], index: 6, kind: input, shape index: {}]   ;;  %s4111_s7 = inlined_call_operand.vmem [shape: f32[1,128], index: 7, kind: input, shape index: {}]   ;;  %s4112_s8 = inlined_call_operand.vmem [shape: f32[1,128], index: 8, kind: input, shape index: {}]   ;;  %s4113_s9 = inlined_call_operand.hbm [shape: bf16[128,512], index: 9, kind: input, shape index: {}]   ;;  %s4114_s10 = inlined_call_operand.vmem [shape: f32[1,512], index: 10, kind: input, shape index: {}]   ;;  %s4115_s11 = inlined_call_operand.hbm [shape: bf16[512,128], index: 11, kind: input, shape index: {}]   ;;  %s4116_s12 = inlined_call_operand.vmem [shape: f32[1,128], index: 12, kind: input, shape index: {}]   ;;  %s4117_s13 = inlined_call_operand.hbm [shape: f32[2,16,128], index: 13, kind: output, shape index: {}, may-alias: {0,13}]  }
   0x1   :  { %19 = vsyncpa [#allocation6], 0 }
   0x2   :  { %20 = vsyncpa [#allocation9], 0 }
   0x3   :  { %21 = vsyncpa [#allocation4], 0  ;;  %s3443_s25 = smov [#allocation5]   ;;  %s3325_s29 = scalar_lea.hbm %s4107_s3, 3072 }
   0x4   :  { %s43_s26 = sshll.u32 %s3443_s25, 4  ;;  %p3326_p0 = scmp.ne.s32.totalorder %s4107_s3, %s3325_s29  ;;  %s44_s26 = int_to_ptr.vmem [resolvable:$true] %s43_s26 }
   0x5   :  { %p3329_p1 = scmp.lt.u32.totalorder %s3325_s29, %s4107_s3 }
   0x7   :  { %p3331_p2 = pnand %p3329_p1, %p3326_p0 }
   0x9   :  { %3334 = shalt.err (!%p3331_p2)
}
   0xa   :  { %s3335_s17 = scalar_lea.vmem %s44_s26, 3072  ;;  %p3340_p4 = scmp.lt.s32.totalorder %s44_s26, %s44_s26 }
   0xb   :  { %p3336_p3 = scmp.ne.s32.totalorder %s44_s26, %s3335_s17  ;;  %p3341_p5 = scmp.lt.s32.totalorder %s3335_s17, %s3335_s17 }
   0xd   :  { %p3342_p6 = por %p3341_p5, %p3340_p4 }
   0xf   :  { %p3343_p7 = pnand %p3342_p6, %p3336_p3 }
  0x11   :  { %3346 = shalt.err (!%p3343_p7)
}
  0x12   :  { %s3444_s18 = smov 192   ;;  %s3445_s19 = smov 12  }
  0x13   :  { %49 = dma.hbm_to_vmem [thread:$0]  %s4107_s3, 3072, %s44_s26, [#allocation6], %s3444_s18, %s3444_s18, %s3445_s19  }
  0x14   :  { %s3446_s22 = smov [#allocation2]   ;;  %s3347_s27 = scalar_lea.hbm %s4104_s0, 512 }
  0x15   :  { %s27_s23 = sshll.u32 %s3446_s22, 4  ;;  %p3348_p8 = scmp.ne.s32.totalorder %s4104_s0, %s3347_s27  ;;  %s28_s23 = int_to_ptr.vmem [resolvable:$true] %s27_s23 }
  0x16   :  { %p3351_p9 = scmp.lt.u32.totalorder %s3347_s27, %s4104_s0 }
  0x18   :  { %p3353_p10 = pnand %p3351_p9, %p3348_p8 }
  0x1a   :  { %3356 = shalt.err (!%p3353_p10)
}
  0x1b   :  { %s3357_s15 = scalar_lea.vmem %s28_s23, 512  ;;  %p3362_p12 = scmp.lt.s32.totalorder %s28_s23, %s28_s23 }
  0x1c   :  { %p3358_p11 = scmp.ne.s32.totalorder %s28_s23, %s3357_s15  ;;  %p3363_p13 = scmp.lt.s32.totalorder %s3357_s15, %s3357_s15 }
  0x1e   :  { %p3364_p0 = por %p3363_p13, %p3362_p12 }
  0x20   :  { %p3365_p1 = pnand %p3364_p0, %p3358_p11 }
  0x22   :  { %3368 = shalt.err (!%p3365_p1)
}
  0x23   :  { %s3447_s3 = smov 128   ;;  %s3448_s26 = smov 8  }
  0x24   :  { %33 = dma.hbm_to_vmem [thread:$0]  %s4104_s0, 512, %s28_s23, [#allocation3], %s3447_s3, %s3447_s3, %s3448_s26  }
  0x25   :  { %s3449_s18 = smov [#allocation7]   ;;  %s3369_s22 = scalar_lea.hbm %s4113_s9, 4096 }
  0x26   :  { %s65_s19 = sshll.u32 %s3449_s18, 4  ;;  %p3370_p2 = scmp.ne.s32.totalorder %s4113_s9, %s3369_s22  ;;  %s66_s19 = int_to_ptr.vmem [resolvable:$true] %s65_s19 }
  0x27   :  { %p3373_p3 = scmp.lt.u32.totalorder %s3369_s22, %s4113_s9 }
  0x29   :  { %p3375_p4 = pnand %p3373_p3, %p3370_p2 }
  0x2b   :  { %3378 = shalt.err (!%p3375_p4)
}
  0x2c   :  { %s3379_s29 = scalar_lea.vmem %s66_s19, 4096  ;;  %p3384_p6 = scmp.lt.s32.totalorder %s66_s19, %s66_s19 }
  0x2d   :  { %p3380_p5 = scmp.ne.s32.totalorder %s66_s19, %s3379_s29  ;;  %p3385_p7 = scmp.lt.s32.totalorder %s3379_s29, %s3379_s29 }
  0x2f   :  { %p3386_p8 = por %p3385_p7, %p3384_p6 }
  0x31   :  { %p3387_p9 = pnand %p3386_p8, %p3380_p5 }
  0x33   :  { %3390 = shalt.err (!%p3387_p9)
}
  0x34   :  { %s3450_s0 = smov 256   ;;  %s3451_s23 = smov 16  }
  0x35   :  { %71 = dma.hbm_to_vmem [thread:$0]  %s4113_s9, 4096, %s66_s19, [#allocation6], %s3450_s0, %s3450_s0, %s3451_s23  }
  0x36   :  { %s3452_s15 = smov [#allocation8]   ;;  %s3391_s20 = scalar_lea.hbm %s4115_s11, 4096 }
  0x37   :  { %s79_s16 = sshll.u32 %s3452_s15, 4  ;;  %p3392_p10 = scmp.ne.s32.totalorder %s4115_s11, %s3391_s20  ;;  %s80_s16 = int_to_ptr.vmem [resolvable:$true] %s79_s16 }
  0x38   :  { %p3395_p11 = scmp.lt.u32.totalorder %s3391_s20, %s4115_s11 }
  0x3a   :  { %p3397_p12 = pnand %p3395_p11, %p3392_p10 }
  0x3c   :  { %3400 = shalt.err (!%p3397_p12)
}
  0x3d   :  { %s3401_s27 = scalar_lea.vmem %s80_s16, 4096  ;;  %p3406_p0 = scmp.lt.s32.totalorder %s80_s16, %s80_s16 }
  0x3e   :  { %p3402_p13 = scmp.ne.s32.totalorder %s80_s16, %s3401_s27  ;;  %p3407_p1 = scmp.lt.s32.totalorder %s3401_s27, %s3401_s27 }
  0x40   :  { %p3408_p2 = por %p3407_p1, %p3406_p0 }
  0x42   :  { %p3409_p3 = pnand %p3408_p2, %p3402_p13 }
  0x44   :  { %3412 = shalt.err (!%p3409_p3)
}
  0x45   :  { %s3453_s9 = smov 64   ;;  %s3454_s19 = smov 4  }
  0x46   :  { %85 = dma.hbm_to_vmem [thread:$0]  %s4115_s11, 4096, %s80_s16, [#allocation9], %s3453_s9, %s3453_s9, %s3454_s19  }
  0x47   :  { %3435 = dma.done.wait [#allocation3], 512  }
  0x48   :  { %3436 = vsyncadd [#allocation3], 4294966784 }
  0x49   :  { %3437 = dma.done.wait [#allocation6], 7168  }
  0x4a   :  { %3438 = vsyncadd [#allocation6], 4294960128 }
  0x4b   :  { %3439 = dma.done.wait [#allocation9], 4096  }
  0x4c   :  { %3440 = vsyncadd [#allocation9], 4294963200  ;;  %v3585_v0 = vld [vmem:[#allocation2] sm:$0xff]  ;;  %v3587_v1 = vld [vmem:[#allocation2 + $0x8] sm:$0xff]  ;;  %v3455_v30 = vmov 0   ;;  %vm3457_vm0 = vmmov 0  }
  0x4d   :  { %105 = vadd.xlane.f32.xlu0 %v3585_v0  ;;  %v118_v2 = vmul.f32 %v3585_v0, %v3585_v0  ;;  %v3089_v3 = vld [vmem:[#allocation5 + $0x4] ss:$12 sps:$4 sm:$0xff]   ;;  %v119_v4 = vmul.f32 %v3587_v1, %v3587_v1  ;;  %v3597_v6 = vld [vmem:[#allocation2 + $0x18] sm:$0xff]  ;;  %v3091_v9 = vld [vmem:[#allocation5] ss:$12 sps:$4 sm:$0xff]   ;;  %391 = vmatprep.mubr.bf16.mxu0 %v3455_v30  ;;  %vm614_vm1 = vcmask 261120  }
  0x4e   :  { %v3594_v5 = vld [vmem:[#allocation2 + $0x10] sm:$0xff]  ;;  %359 = vmatprep.subr.bf16.mxu0 %v3089_v3  ;;  %v121_v8 = vmul.f32 %v3597_v6, %v3597_v6  ;;  %v3092_v10 = vld [vmem:[#allocation5 + $0x1c] ss:$12 sps:$4 sm:$0xff]   ;;  %v3094_v11 = vld [vmem:[#allocation5 + $0x18] ss:$12 sps:$4 sm:$0xff]   ;;  %s3459_s14 = smov 32  }
  0x4f   :  { %122 = vadd.xlane.f32.xlu1 %v118_v2  ;;  %v120_v7 = vmul.f32 %v3594_v5, %v3594_v5  ;;  %360 = vmatpush1.bf16.msra.mxu0 %v3091_v9  ;;  %v3095_v12 = vld [vmem:[#allocation5 + $0x34] ss:$12 sps:$4 sm:$0xff]   ;;  %v3098_v14 = vld [vmem:[#allocation5 + $0x30] ss:$12 sps:$4 sm:$0xff]   ;;  %v3099_v15 = vld [vmem:[#allocation5 + $0x4c] ss:$12 sps:$4 sm:$0xff]  }
  0x50   :  { %361 = vmatprep.subr.bf16.mxu0 %v3092_v10  ;;  %v3097_v13 = vld [vmem:[#allocation5 + $0x8] ss:$12 sps:$4 sm:$0xff]   ;;  %v3101_v16 = vld [vmem:[#allocation5 + $0x20] ss:$12 sps:$4 sm:$0xff]   ;;  %v3103_v18 = vld [vmem:[#allocation5 + $0x64] ss:$12 sps:$4 sm:$0xff]  }
  0x51   :  { %107 = vadd.xlane.f32.xlu0 %v3587_v1  ;;  %2814 = vmatprep.subr.bf16.mxu1 %v3097_v13  ;;  %v3102_v17 = vld [vmem:[#allocation5 + $0x48] ss:$12 sps:$4 sm:$0xff]   ;;  %v3105_v19 = vld [vmem:[#allocation5 + $0x38] ss:$12 sps:$4 sm:$0xff]   ;;  %v3106_v20 = vld [vmem:[#allocation5 + $0x60] ss:$12 sps:$4 sm:$0xff]  }
  0x52   :  { %2815 = vmatpush3.bf16.msra.mxu1 %v3097_v13  ;;  %v3107_v21 = vld [vmem:[#allocation5 + $0x7c] ss:$12 sps:$4 sm:$0xff]   ;;  %v3110_v23 = vld [vmem:[#allocation5 + $0x78] ss:$12 sps:$4 sm:$0xff]   ;;  %v3111_v24 = vld [vmem:[#allocation5 + $0x94] ss:$12 sps:$4 sm:$0xff]  }
  0x53   :  { %124 = vadd.xlane.f32.xlu1 %v119_v4  ;;  %362 = vmatpush1.bf16.msra.mxu0 %v3094_v11  ;;  %v3109_v22 = vld [vmem:[#allocation5 + $0x50] ss:$12 sps:$4 sm:$0xff]   ;;  %v3113_v25 = vld [vmem:[#allocation5 + $0x68] ss:$12 sps:$4 sm:$0xff]   ;;  %v3115_v27 = vld [vmem:[#allocation5 + $0xac] ss:$12 sps:$4 sm:$0xff]  }
  0x54   :  { %363 = vmatprep.subr.bf16.mxu0 %v3095_v12  ;;  %2816 = vmatprep.subr.bf16.mxu1 %v3101_v16  ;;  %v3114_v26 = vld [vmem:[#allocation5 + $0x90] ss:$12 sps:$4 sm:$0xff]   ;;  %v3117_v28 = vld [vmem:[#allocation5 + $0x80] ss:$12 sps:$4 sm:$0xff]   ;;  %v3118_v29 = vld [vmem:[#allocation5 + $0xa8] ss:$12 sps:$4 sm:$0xff]  }
  0x55   :  { %109 = vadd.xlane.f32.xlu0 %v3594_v5  ;;  %v3119_v31 = vld [vmem:[#allocation5 + $0x98] ss:$12 sps:$4 sm:$0xff]   ;;  %v3120_v32 = vld [vmem:[#allocation5 + $0xb0] ss:$12 sps:$4 sm:$0xff]   ;;  %v2588_v2 = vld [vmem:[%s4105_s1] ss:$0 sm:$0xff] }
  0x56   :  { %2817 = vmatpush3.bf16.msra.mxu1 %v3101_v16  ;;  %v2589_v9 = vld [vmem:[%s4106_s2] ss:$0 sm:$0xff]  ;;  %vm991_vm4 = vcmask 130048   ;;  %vm1580_vm5 = vcmask 523264   ;;  %vm1585_vm6 = vcmask 785408  }
  0x57   :  { %111 = vadd.xlane.f32.xlu1 %v3597_v6  ;;  %364 = vmatpush1.bf16.msra.mxu0 %v3098_v14 }
  0x58   :  { %365 = vmatprep.subr.bf16.mxu0 %v3099_v15  ;;  %2818 = vmatprep.subr.bf16.mxu1 %v3105_v19 }
  0x59   :  { %126 = vadd.xlane.f32.xlu0 %v120_v7 }
  0x5a   :  { %2819 = vmatpush3.bf16.msra.mxu1 %v3105_v19 }
  0x5b   :  { %128 = vadd.xlane.f32.xlu1 %v121_v8  ;;  %366 = vmatpush1.bf16.msra.mxu0 %v3102_v17 }
  0x5c   :  { %367 = vmatprep.subr.bf16.mxu0 %v3103_v18  ;;  %2820 = vmatprep.subr.bf16.mxu1 %v3109_v22 }
  0x5e   :  { %2821 = vmatpush3.bf16.msra.mxu1 %v3109_v22 }
  0x5f   :  { %368 = vmatpush1.bf16.msra.mxu0 %v3106_v20  ;;  %2822 = vmatprep.subr.bf16.mxu1 %v3113_v25 }
  0x60   :  { %369 = vmatprep.subr.bf16.mxu0 %v3107_v21 }
  0x62   :  { %2823 = vmatpush3.bf16.msra.mxu1 %v3113_v25  ;;  %v214_v25 = vld [vmem:[%s4108_s4] sm:$0x7]  ;;  %s3458_s4 = smov 96  }
  0x63   :  { %370 = vmatpush1.bf16.msra.mxu0 %v3110_v23  ;;  %2824 = vmatprep.subr.bf16.mxu1 %v3117_v28 }
  0x64   :  { %371 = vmatprep.subr.bf16.mxu0 %v3111_v24 }
  0x66   :  { %2825 = vmatpush3.bf16.msra.mxu1 %v3117_v28 }
  0x67   :  { %372 = vmatpush1.bf16.msra.mxu0 %v3114_v26  ;;  %2826 = vmatprep.subr.bf16.mxu1 %v3119_v31 }
  0x68   :  { %373 = vmatprep.subr.bf16.mxu0 %v3115_v27 }
  0x6a   :  { %2827 = vmatpush3.bf16.msra.mxu1 %v3119_v31 }
  0x6b   :  { %374 = vmatpush1.bf16.msra.mxu0 %v3118_v29  ;;  %2828 = vmatprep.subr.bf16.mxu1 %v3120_v32 }
  0x6e   :  { %2829 = vmatpush3.bf16.msra.mxu1 %v3120_v32 }
  0xda   :  { %v106_v33 = vpop.xlane.xlu0 %105 }
  0xdb   :  { %v114_v34 = vmul.f32 0.0078125, %v106_v33 }
  0xdc   :  { %v123_v35 = vpop.xlane.xlu1 %122 }
  0xdd   :  { %v134_v36 = vmul.f32 %v114_v34, %v114_v34  ;;  %v130_v37 = vmul.f32 0.0078125, %v123_v35  ;;  %v142_v60 = vsub.f32 %v3585_v0, %v114_v34 }
  0xde   :  { %v108_v38 = vpop.xlane.xlu0 %107 }
  0xdf   :  { %v138_v39 = vsub.f32 %v130_v37, %v134_v36  ;;  %v115_v40 = vmul.f32 0.0078125, %v108_v38 }
  0xe0   :  { %v125_v41 = vpop.xlane.xlu1 %124 }
  0xe1   :  { %v146_v42 = vadd.f32 1e-05, %v138_v39  ;;  %v135_v43 = vmul.f32 %v115_v40, %v115_v40  ;;  %v131_v44 = vmul.f32 0.0078125, %v125_v41  ;;  %v143_v3 = vsub.f32 %v3587_v1, %v115_v40 }
  0xe2   :  { %v110_v45 = vpop.xlane.xlu0 %109 }
  0xe3   :  { %3209 = vrsqrt.f32 %v146_v42  ;;  %v139_v46 = vsub.f32 %v131_v44, %v135_v43  ;;  %v116_v47 = vmul.f32 0.0078125, %v110_v45 }
  0xe4   :  { %v112_v48 = vpop.xlane.xlu1 %111 }
  0xe5   :  { %v147_v49 = vadd.f32 1e-05, %v139_v46  ;;  %v136_v50 = vmul.f32 %v116_v47, %v116_v47  ;;  %v117_v51 = vmul.f32 0.0078125, %v112_v48  ;;  %v144_v0 = vsub.f32 %v3594_v5, %v116_v47 }
  0xe6   :  { %v127_v52 = vpop.xlane.xlu0 %126  ;;  %v3456_v5 = vmov 0.0  }
  0xe7   :  { %3211 = vrsqrt.f32 %v147_v49  ;;  %v132_v53 = vmul.f32 0.0078125, %v127_v52  ;;  %v137_v55 = vmul.f32 %v117_v51, %v117_v51  ;;  %v145_v14 = vsub.f32 %v3597_v6, %v117_v51  ;;  %2834 = vmatprep.subr.bf16.mxu0 %v3456_v5  ;;  %2846 = vmatprep.subr.bf16.mxu1 %v3456_v5 }
  0xe8   :  { %v129_v54 = vpop.xlane.xlu1 %128  ;;  %v216_v6 = vlaneseq }
  0xe9   :  { %v140_v56 = vsub.f32 %v132_v53, %v136_v50  ;;  %v133_v57 = vmul.f32 0.0078125, %v129_v54 }
  0xea   :  { %v3624_v23 = vshrl.u32 %v216_v6, 7 }
  0xeb   :  { %v148_v58 = vadd.f32 1e-05, %v140_v56  ;;  %v141_v59 = vsub.f32 %v133_v57, %v137_v55 }
  0xec   :  { %v218_v24 = vsub.s32 0, %v3624_v23  ;;  %v222_v26 = vsub.s32 1, %v3624_v23  ;;  %v226_v36 = vsub.s32 2, %v3624_v23 }
  0xed   :  { %v3210_v61 = vpop.eup %3209  ;;  %3213 = vrsqrt.f32 %v148_v58  ;;  %v149_v62 = vadd.f32 1e-05, %v141_v59 }
  0xee   :  { %v154_v63 = vmul.f32 %v3210_v61, %v142_v60  ;;  %v219_v27 = vrot.slane %v214_v25, %v218_v24  ;;  %v223_v29 = vrot.slane %v214_v25, %v222_v26  ;;  %v227_v43 = vrot.slane %v214_v25, %v226_v36 }
  0xef   :  { %3215 = vrsqrt.f32 %v149_v62 }
  0xf0   :  { %v165_v8 = vmul.f32 %v2588_v2, %v154_v63 }
  0xf1   :  { %v3212_v4 = vpop.eup %3211 }
  0xf2   :  { %v155_v7 = vmul.f32 %v3212_v4, %v143_v3  ;;  %v176_v11 = vadd.f32 %v2589_v9, %v165_v8 }
  0xf4   :  { %v166_v10 = vmul.f32 %v2588_v2, %v155_v7 }
  0xf6   :  { %v177_v12 = vadd.f32 %v2589_v9, %v166_v10 }
  0xf7   :  { %v3214_v13 = vpop.eup %3213 }
  0xf8   :  { %v180_v15 = vpack.c.bf16 %v177_v12, %v176_v11  ;;  %v156_v16 = vmul.f32 %v3214_v13, %v144_v0 }
  0xf9   :  { %v3216_v17 = vpop.eup %3215 }
  0xfa   :  { %392 = vmatmul.mubr.bf16.vlgmr.msra.gmra.mrb[0].mxu0 %v180_v15  ;;  %2830 = vmatprep.mubr.bf16.mxu1 %v180_v15  ;;  %v157_v1 = vmul.f32 %v3216_v17, %v145_v14  ;;  %v167_v18 = vmul.f32 %v2588_v2, %v156_v16 }
  0xfb   :  { %401 = vmatprep.mubr.bf16.mxu0 %v3455_v30 }
  0xfc   :  { %v168_v19 = vmul.f32 %v2588_v2, %v157_v1  ;;  %v178_v20 = vadd.f32 %v2589_v9, %v167_v18 }
  0xfe   :  { %v179_v21 = vadd.f32 %v2589_v9, %v168_v19 }
 0x100   :  { %v181_v22 = vpack.c.bf16 %v179_v21, %v178_v20 }
 0x102   :  { %402 = vmatmul.mubr.bf16.gmra.mrb[4].mxu0 %v181_v22  ;;  %2831 = vmatmul.mubr.bf16.vlgmr.msra.gmra.mrb[0].mxu1 %v181_v22 }
 0x103   :  { %2836 = vmatprep.mubr.msk.bf16.mxu0 %vm3457_vm0, %v3456_v5  ;;  %2848 = vmatprep.mubr.msk.bf16.mxu1 %vm3457_vm0, %v3456_v5 }
 0x1cd   :  { %v393_v28 = vpop.f32.mrb[0].mxu0 }
 0x1ce   :  { %v395_v31 = vpop.f32.mrb[1].mxu0  ;;  %v394_v33 = vadd.f32 %v393_v28, %v219_v27 }
 0x1cf   :  { %v397_v32 = vpop.f32.mrb[2].mxu0  ;;  %v396_v37 = vadd.f32 %v395_v31, %v223_v29 }
 0x1d0   :  { %v398_v34 = vadd.f32 %v397_v32, %v219_v27  ;;  %v399_v35 = vpop.f32.mrb[3].mxu0 }
 0x1d1   :  { %v400_v38 = vadd.f32 %v399_v35, %v223_v29 }
 0x1d2   :  { %v501_v39 = vpack.c.bf16 %v398_v34, %v394_v33  ;;  %v2974_v40 = vpack.i.bf16 %v398_v34, %v394_v33 }
 0x1d3   :  { %v2969_v41 = vpack.i.bf16 %v400_v38, %v396_v37  ;;  %v549_v42 = vpack.c.bf16 %v400_v38, %v396_v37 }
 0x1d4   :  { %2975 = vrot.lane.b32.xlu1 %v2974_v40, %s3458_s4 }
 0x1d5   :  { %2970 = vrot.lane.b32.xlu0 %v2969_v41, %s3458_s4  ;;  %v403_v44 = vpop.f32.mrb[4].mxu0  ;;  %v2832_v45 = vpop.f32.mrb[0].mxu1  ;;  %v619_v46 = vsel %vm614_vm1, %v549_v42, 0 }
 0x1d6   :  { %v405_v47 = vpop.f32.mrb[5].mxu0  ;;  %v446_v48 = vpop.f32.mrb[1].mxu1  ;;  %2835 = vmatpush3.bf16.xpose.msra.mxu0 %v619_v46  ;;  %v404_v51 = vadd.f32 %v403_v44, %v219_v27  ;;  %v3642_v52 = vadd.f32 %v2832_v45, %v227_v43 }
 0x1d7   :  { %v407_v49 = vpop.f32.mrb[6].mxu0  ;;  %v2833_v50 = vpop.f32.mrb[2].mxu1  ;;  %2840 = vmatprep.subr.bf16.mxu0 %v3456_v5  ;;  %v406_v57 = vadd.f32 %v405_v47, %v223_v29  ;;  %v3646_v58 = vadd.f32 %v446_v48, %v227_v43 }
 0x1d8   :  { %v408_v53 = vadd.f32 %v407_v49, %v219_v27  ;;  %v3644_v54 = vadd.f32 %v2833_v50, %v227_v43  ;;  %v409_v55 = vpop.f32.mrb[7].mxu0  ;;  %v449_v56 = vpop.f32.mrb[3].mxu1 }
 0x1d9   :  { %v410_v59 = vadd.f32 %v409_v55, %v223_v29  ;;  %v3648_v60 = vadd.f32 %v449_v56, %v227_v43 }
 0x1da   :  { %v502_v61 = vpack.c.bf16 %v408_v53, %v404_v51  ;;  %v2989_v62 = vpack.i.bf16 %v408_v53, %v404_v51  ;;  %v598_v4 = vpack.c.bf16 %v3644_v54, %v3642_v52  ;;  %v3657_v7 = vpack.i.bf16 %v3644_v54, %v3642_v52 }
 0x1db   :  { %v2979_v63 = vpack.i.bf16 %v410_v59, %v406_v57  ;;  %v550_v2 = vpack.c.bf16 %v410_v59, %v406_v57  ;;  %v597_v3 = vpack.c.bf16 %v3648_v60, %v3646_v58  ;;  %v3661_v8 = vpack.i.bf16 %v3648_v60, %v3646_v58 }
 0x1dc   :  { %2990 = vrot.lane.b32.xlu0 %v2989_v62, %s3458_s4  ;;  %v609_v58 = vand.u32 127, %v216_v6  ;;  %v607_v60 = vadd.s32 8, %v3624_v23 }
 0x1dd   :  { %2837 = vmatmul.mubr.msk.bf16.vlgmr.msra.gmra.mrb[8].mxu0 %vm614_vm1, %v501_v39  ;;  %2980 = vrot.lane.b32.xlu1 %v2979_v63, %s3458_s4  ;;  %v666_v9 = vsel %vm614_vm1, %v550_v2, 0 }
 0x1de   :  { %2841 = vmatpush3.bf16.xpose.msra.mxu0 %v666_v9  ;;  %2842 = vmatprep.mubr.msk.bf16.mxu0 %vm3457_vm0, %v3456_v5  ;;  %vm610_vm2 = vcmp.ge.s32.totalorder %v3624_v23, %v609_v58  ;;  %vm611_vm3 = vcmp.ge.s32.totalorder %v607_v60, %v609_v58 }
 0x1df   :  { %2852 = vmatprep.subr.bf16.mxu0 %v3456_v5 }
 0x1e0   :  { %2995 = vrot.lane.b32.xlu0 %v2974_v40, %s3453_s9 }
 0x1e1   :  { %2985 = vrot.lane.b32.xlu1 %v2969_v41, %s3453_s9 }
 0x1e4   :  { %3010 = vrot.lane.b32.xlu0 %v2989_v62, %s3453_s9 }
 0x1e5   :  { %3000 = vrot.lane.b32.xlu1 %v2979_v63, %s3453_s9  ;;  %2843 = vmatmul.mubr.msk.bf16.vlgmr.msra.gmra.mrb[12].mxu0 %vm614_vm1, %v502_v61 }
 0x1e6   :  { %2854 = vmatprep.mubr.msk.bf16.mxu0 %vm3457_vm0, %v3456_v5 }
 0x1e8   :  { %3020 = vrot.lane.b32.xlu0 %v2974_v40, %s3459_s14 }
 0x1e9   :  { %3005 = vrot.lane.b32.xlu1 %v2969_v41, %s3459_s14 }
 0x1ed   :  { %3015 = vrot.lane.b32.xlu1 %v2979_v63, %s3459_s14 }
 0x1f1   :  { %3025 = vrot.lane.b32.xlu1 %v2989_v62, %s3459_s14 }
 0x246   :  { %v2976_v13 = vpop.permute.xlu1 %2975 }
 0x247   :  { %v2971_v10 = vpop.permute.xlu0 %2970  ;;  %v2978_v15 = vunpack.i.h.bf16 %v2976_v13  ;;  %v2977_v16 = vunpack.i.l.bf16 %v2976_v13 }
 0x248   :  { %v2973_v0 = vunpack.i.h.bf16 %v2971_v10  ;;  %v2972_v11 = vunpack.i.l.bf16 %v2971_v10 }
 0x249   :  { %v503_v20 = vpack.c.bf16 %v2978_v15, %v2977_v16 }
 0x24a   :  { %v551_v12 = vpack.c.bf16 %v2973_v0, %v2972_v11 }
 0x24c   :  { %v713_v14 = vsel %vm614_vm1, %v551_v12, 0 }
 0x24d   :  { %2847 = vmatpush3.bf16.xpose.msra.mxu1 %v713_v14 }
 0x24e   :  { %v2991_v17 = vpop.permute.xlu0 %2990  ;;  %2858 = vmatprep.subr.bf16.mxu1 %v3456_v5 }
 0x24f   :  { %v2981_v1 = vpop.permute.xlu1 %2980  ;;  %v2993_v31 = vunpack.i.h.bf16 %v2991_v17  ;;  %v2992_v32 = vunpack.i.l.bf16 %v2991_v17 }
 0x250   :  { %v2983_v18 = vunpack.i.h.bf16 %v2981_v1  ;;  %v2982_v19 = vunpack.i.l.bf16 %v2981_v1 }
 0x251   :  { %v504_v40 = vpack.c.bf16 %v2993_v31, %v2992_v32 }
 0x252   :  { %v552_v21 = vpack.c.bf16 %v2983_v18, %v2982_v19  ;;  %v2996_v22 = vpop.permute.xlu0 %2995 }
 0x253   :  { %v2986_v25 = vpop.permute.xlu1 %2985  ;;  %v2998_v41 = vunpack.i.h.bf16 %v2996_v22  ;;  %v2997_v42 = vunpack.i.l.bf16 %v2996_v22 }
 0x254   :  { %v2988_v27 = vunpack.i.h.bf16 %v2986_v25  ;;  %v2987_v28 = vunpack.i.l.bf16 %v2986_v25  ;;  %2849 = vmatmul.mubr.msk.bf16.vlgmr.msra.gmra.mrb[4].mxu1 %vm614_vm1, %v503_v20  ;;  %v760_v29 = vsel %vm614_vm1, %v552_v21, 0 }
 0x255   :  { %2853 = vmatpush3.bf16.xpose.msra.mxu0 %v760_v29  ;;  %2860 = vmatprep.mubr.msk.bf16.mxu1 %vm3457_vm0, %v3456_v5  ;;  %v505_v48 = vpack.c.bf16 %v2998_v41, %v2997_v42 }
 0x256   :  { %v553_v33 = vpack.c.bf16 %v2988_v27, %v2987_v28  ;;  %2864 = vmatprep.subr.bf16.mxu0 %v3456_v5  ;;  %v3011_v39 = vpop.permute.xlu0 %3010 }
 0x257   :  { %v3001_v34 = vpop.permute.xlu1 %3000  ;;  %v3013_v49 = vunpack.i.h.bf16 %v3011_v39  ;;  %v3012_v50 = vunpack.i.l.bf16 %v3011_v39 }
 0x258   :  { %v3003_v35 = vunpack.i.h.bf16 %v3001_v34  ;;  %v3002_v37 = vunpack.i.l.bf16 %v3001_v34  ;;  %v807_v38 = vsel %vm614_vm1, %v553_v33, 0 }
 0x259   :  { %2859 = vmatpush3.bf16.xpose.msra.mxu1 %v807_v38  ;;  %v506_v61 = vpack.c.bf16 %v3013_v49, %v3012_v50 }
 0x25a   :  { %v554_v43 = vpack.c.bf16 %v3003_v35, %v3002_v37  ;;  %2870 = vmatprep.subr.bf16.mxu1 %v3456_v5  ;;  %v3021_v53 = vpop.permute.xlu0 %3020 }
 0x25b   :  { %v3006_v44 = vpop.permute.xlu1 %3005  ;;  %v3023_v62 = vunpack.i.h.bf16 %v3021_v53  ;;  %v3022_v63 = vunpack.i.l.bf16 %v3021_v53 }
 0x25c   :  { %v3008_v45 = vunpack.i.h.bf16 %v3006_v44  ;;  %v3007_v46 = vunpack.i.l.bf16 %v3006_v44  ;;  %2855 = vmatmul.mubr.msk.bf16.vlgmr.msra.gmra.mrb[16].mxu0 %vm614_vm1, %v504_v40  ;;  %v854_v47 = vsel %vm614_vm1, %v554_v43, 0 }
 0x25d   :  { %2865 = vmatpush3.bf16.xpose.msra.mxu0 %v854_v47  ;;  %2866 = vmatprep.mubr.msk.bf16.mxu0 %vm3457_vm0, %v3456_v5  ;;  %v507_v0 = vpack.c.bf16 %v3023_v62, %v3022_v63 }
 0x25e   :  { %v555_v51 = vpack.c.bf16 %v3008_v45, %v3007_v46  ;;  %2876 = vmatprep.subr.bf16.mxu0 %v3456_v5 }
 0x25f   :  { %v3016_v55 = vpop.permute.xlu1 %3015 }
 0x260   :  { %v3018_v56 = vunpack.i.h.bf16 %v3016_v55  ;;  %v3017_v57 = vunpack.i.l.bf16 %v3016_v55  ;;  %2861 = vmatmul.mubr.msk.bf16.vlgmr.msra.gmra.mrb[8].mxu1 %vm614_vm1, %v505_v48  ;;  %v901_v59 = vsel %vm614_vm1, %v555_v51, 0 }
 0x261   :  { %2871 = vmatpush3.bf16.xpose.msra.mxu1 %v901_v59  ;;  %2872 = vmatprep.mubr.msk.bf16.mxu1 %vm3457_vm0, %v3456_v5 }
 0x262   :  { %v556_v2 = vpack.c.bf16 %v3018_v56, %v3017_v57  ;;  %2882 = vmatprep.subr.bf16.mxu1 %v3456_v5 }
 0x263   :  { %v3026_v9 = vpop.permute.xlu1 %3025 }
 0x264   :  { %2867 = vmatmul.mubr.msk.bf16.vlgmr.msra.gmra.mrb[20].mxu0 %vm614_vm1, %v506_v61  ;;  %v948_v10 = vsel %vm614_vm1, %v556_v2, 0  ;;  %v3028_v11 = vunpack.i.h.bf16 %v3026_v9  ;;  %v3027_v12 = vunpack.i.l.bf16 %v3026_v9 }
 0x265   :  { %2877 = vmatpush3.bf16.xpose.msra.mxu0 %v948_v10  ;;  %2878 = vmatprep.mubr.msk.bf16.mxu0 %vm3457_vm0, %v3456_v5 }
 0x266   :  { %2888 = vmatprep.subr.bf16.mxu0 %v3456_v5  ;;  %v508_v13 = vpack.c.bf16 %v3028_v11, %v3027_v12 }
 0x268   :  { %2873 = vmatmul.mubr.msk.bf16.vlgmr.msra.gmra.mrb[12].mxu1 %vm614_vm1, %v507_v0 }
 0x269   :  { %2883 = vmatpush3.bf16.msra.mxu1 %v597_v3  ;;  %2884 = vmatprep.mubr.msk.bf16.mxu1 %vm3457_vm0, %v3456_v5  ;;  %v3460_v3 = vmov -1e+30  }
 0x26a   :  { %2894 = vmatprep.subr.bf16.mxu1 %v3456_v5  ;;  %v3721_v14 = vsel %vm610_vm2, 0.0, %v3460_v3  ;;  %v3723_v16 = vsel %vm611_vm3, 0.0, %v3460_v3 }
 0x26c   :  { %2879 = vmatmul.mubr.msk.bf16.vlgmr.msra.gmra.mrb[24].mxu0 %vm614_vm1, %v508_v13 }
 0x26d   :  { %2889 = vmatpush3.bf16.msra.mxu0 %v598_v4  ;;  %2890 = vmatprep.mubr.msk.bf16.mxu0 %vm3457_vm0, %v3456_v5 }
 0x26e   :  { %2900 = vmatprep.subr.bf16.mxu0 %v3456_v5 }
 0x2b0   :  { %v655_v15 = vpop.f32.mrb[8].mxu0 }
 0x2b1   :  { %v3726_v52 = vadd.f32 %v655_v15, %v3721_v14  ;;  %v2838_v54 = vpop.f32.mrb[9].mxu0 }
 0x2b2   :  { %v658_v4 = vpop.f32.mrb[10].mxu0 }
 0x2b3   :  { %v3729_v17 = vadd.f32 %v658_v4, %v3723_v16  ;;  %v2839_v6 = vpop.f32.mrb[11].mxu0  ;;  %v992_v1 = vsel %vm991_vm4, %v3726_v52, -inf }
 0x2b4   :  { %993 = vmax.xlane.f32.xlu0 %v992_v1 }
 0x2b5   :  { %v995_v18 = vsel %vm991_vm4, %v3729_v17, -inf }
 0x2b6   :  { %996 = vmax.xlane.f32.xlu1 %v995_v18 }
 0x2b8   :  { %v702_v19 = vpop.f32.mrb[12].mxu0 }
 0x2b9   :  { %v3736_v20 = vadd.f32 %v702_v19, %v3721_v14  ;;  %v2844_v21 = vpop.f32.mrb[13].mxu0 }
 0x2ba   :  { %v705_v22 = vpop.f32.mrb[14].mxu0 }
 0x2bb   :  { %v3739_v25 = vadd.f32 %v705_v22, %v3723_v16  ;;  %v2845_v27 = vpop.f32.mrb[15].mxu0  ;;  %v998_v28 = vsel %vm991_vm4, %v3736_v20, -inf }
 0x2bc   :  { %999 = vmax.xlane.f32.xlu0 %v998_v28 }
 0x2bd   :  { %v1001_v29 = vsel %vm991_vm4, %v3739_v25, -inf }
 0x2c0   :  { %1002 = vmax.xlane.f32.xlu0 %v1001_v29 }
 0x327   :  { %v749_v31 = vpop.f32.mrb[4].mxu1 }
 0x328   :  { %v3746_v32 = vadd.f32 %v749_v31, %v3721_v14  ;;  %v2850_v33 = vpop.f32.mrb[5].mxu1 }
 0x329   :  { %v752_v34 = vpop.f32.mrb[6].mxu1 }
 0x32a   :  { %v3749_v35 = vadd.f32 %v752_v34, %v3723_v16  ;;  %v2851_v37 = vpop.f32.mrb[7].mxu1  ;;  %v1004_v38 = vsel %vm991_vm4, %v3746_v32, -inf }
 0x32b   :  { %1005 = vmax.xlane.f32.xlu0 %v1004_v38 }
 0x32c   :  { %v1007_v39 = vsel %vm991_vm4, %v3749_v35, -inf }
 0x32d   :  { %1008 = vmax.xlane.f32.xlu1 %v1007_v39 }
 0x32f   :  { %v796_v40 = vpop.f32.mrb[16].mxu0 }
 0x330   :  { %v3756_v41 = vadd.f32 %v796_v40, %v3721_v14  ;;  %v2856_v42 = vpop.f32.mrb[17].mxu0 }
 0x331   :  { %v799_v43 = vpop.f32.mrb[18].mxu0 }
 0x332   :  { %v3759_v44 = vadd.f32 %v799_v43, %v3723_v16  ;;  %v2857_v45 = vpop.f32.mrb[19].mxu0  ;;  %v1010_v46 = vsel %vm991_vm4, %v3756_v41, -inf }
 0x333   :  { %1011 = vmax.xlane.f32.xlu0 %v1010_v46  ;;  %v843_v47 = vpop.f32.mrb[8].mxu1 }
 0x334   :  { %v3764_v48 = vadd.f32 %v843_v47, %v3721_v14  ;;  %v2862_v49 = vpop.f32.mrb[9].mxu1  ;;  %v1013_v50 = vsel %vm991_vm4, %v3759_v44, -inf }
 0x335   :  { %1014 = vmax.xlane.f32.xlu1 %v1013_v50  ;;  %v846_v51 = vpop.f32.mrb[10].mxu1 }
 0x336   :  { %v3769_v53 = vadd.f32 %v846_v51, %v3723_v16  ;;  %v2863_v55 = vpop.f32.mrb[11].mxu1  ;;  %v1016_v56 = vsel %vm991_vm4, %v3764_v48, -inf }
 0x337   :  { %v890_v57 = vpop.f32.mrb[20].mxu0  ;;  %1017 = vmax.xlane.f32.xlu0 %v1016_v56 }
 0x338   :  { %v3774_v59 = vadd.f32 %v890_v57, %v3721_v14  ;;  %v2868_v61 = vpop.f32.mrb[21].mxu0  ;;  %v1019_v62 = vsel %vm991_vm4, %v3769_v53, -inf }
 0x339   :  { %v893_v63 = vpop.f32.mrb[22].mxu0  ;;  %1020 = vmax.xlane.f32.xlu1 %v1019_v62 }
 0x33a   :  { %v3779_v2 = vadd.f32 %v893_v63, %v3723_v16  ;;  %v2869_v9 = vpop.f32.mrb[23].mxu0  ;;  %v1022_v10 = vsel %vm991_vm4, %v3774_v59, -inf }
 0x33b   :  { %1023 = vmax.xlane.f32.xlu0 %v1022_v10  ;;  %v937_v0 = vpop.f32.mrb[12].mxu1 }
 0x33c   :  { %v3784_v11 = vadd.f32 %v937_v0, %v3721_v14  ;;  %v2874_v12 = vpop.f32.mrb[13].mxu1  ;;  %v1025_v13 = vsel %vm991_vm4, %v3779_v2, -inf }
 0x33d   :  { %1026 = vmax.xlane.f32.xlu1 %v1025_v13  ;;  %v940_v58 = vpop.f32.mrb[14].mxu1 }
 0x33e   :  { %v3789_v60 = vadd.f32 %v940_v58, %v3723_v16  ;;  %v2875_v3 = vpop.f32.mrb[15].mxu1  ;;  %v1028_v15 = vsel %vm991_vm4, %v3784_v11, -inf }
 0x33f   :  { %v984_v54 = vpop.f32.mrb[24].mxu0  ;;  %1029 = vmax.xlane.f32.xlu0 %v1028_v15 }
 0x340   :  { %v3794_v4 = vadd.f32 %v984_v54, %v3721_v14  ;;  %v2880_v6 = vpop.f32.mrb[25].mxu0  ;;  %v1031_v1 = vsel %vm991_vm4, %v3789_v60, -inf }
 0x341   :  { %v987_v18 = vpop.f32.mrb[26].mxu0  ;;  %1032 = vmax.xlane.f32.xlu1 %v1031_v1  ;;  %v994_v14 = vpop.xlane.xlu0 %993 }
 0x342   :  { %v2881_v19 = vpop.f32.mrb[27].mxu0  ;;  %v1034_v21 = vsel %vm991_vm4, %v3794_v4, -inf  ;;  %v1040_v22 = vsub.f32 %v3726_v52, %v994_v14  ;;  %v3811_v34 = vadd.f32 %v987_v18, %v3723_v16 }
 0x343   :  { %1035 = vmax.xlane.f32.xlu0 %v1034_v21  ;;  %v997_v39 = vpop.xlane.xlu1 %996 }
 0x344   :  { %v1056_v28 = vmul.f32 1.442695, %v1040_v22  ;;  %v1037_v52 = vsel %vm991_vm4, %v3811_v34, -inf  ;;  %v1041_v16 = vsub.f32 %v3729_v17, %v997_v39 }
 0x346   :  { %3217 = vpow2.f32 %v1056_v28  ;;  %v1058_v42 = vmul.f32 1.442695, %v1041_v16 }
 0x349   :  { %v1000_v27 = vpop.xlane.xlu0 %999 }
 0x34a   :  { %v1042_v29 = vsub.f32 %v3736_v20, %v1000_v27 }
 0x34c   :  { %v1060_v31 = vmul.f32 1.442695, %v1042_v29 }
 0x34d   :  { %v1003_v40 = vpop.xlane.xlu0 %1002 }
 0x34e   :  { %3219 = vpow2.f32 %v1060_v31  ;;  %v1043_v43 = vsub.f32 %v3739_v25, %v1003_v40 }
 0x34f   :  { %3221 = vpow2.f32 %v1058_v42 }
 0x350   :  { %v3808_v33 = vpop.eup %3217  ;;  %v1062_v45 = vmul.f32 1.442695, %v1043_v43 }
 0x351   :  { %v1088_v37 = vsel %vm991_vm4, %v3808_v33, 0.0 }
 0x352   :  { %3035 = vrot.lane.b32.xlu1 %v3657_v7, %s3458_s4  ;;  %3223 = vpow2.f32 %v1062_v45 }
 0x356   :  { %3040 = vrot.lane.b32.xlu1 %v3661_v8, %s3453_s9 }
 0x358   :  { %v3815_v38 = vpop.eup %3219 }
 0x359   :  { %3030 = vrot.lane.b32.xlu0 %v3661_v8, %s3458_s4  ;;  %v1094_v20 = vsel %vm991_vm4, %v3815_v38, 0.0  ;;  %v3825_v46 = vpop.eup %3221 }
 0x35a   :  { %v1091_v47 = vsel %vm991_vm4, %v3825_v46, 0.0 }
 0x35c   :  { %v3829_v49 = vpop.eup %3223 }
 0x35d   :  { %v1097_v50 = vsel %vm991_vm4, %v3829_v49, 0.0 }
 0x378   :  { %1089 = vadd.xlane.f32.xlu0 %v1088_v37 }
 0x37a   :  { %1038 = vmax.xlane.f32.xlu1 %v1037_v52 }
 0x37c   :  { %1095 = vadd.xlane.f32.xlu0 %v1094_v20 }
 0x38b   :  { %3045 = vrot.lane.b32.xlu1 %v3657_v7, %s3453_s9 }
 0x3af   :  { %1092 = vadd.xlane.f32.xlu1 %v1091_v47 }
 0x3b3   :  { %1098 = vadd.xlane.f32.xlu1 %v1097_v50 }
 0x3b8   :  { %v1006_v17 = vpop.xlane.xlu0 %1005 }
 0x3b9   :  { %v1044_v51 = vsub.f32 %v3746_v32, %v1006_v17 }
 0x3ba   :  { %v1009_v55 = vpop.xlane.xlu1 %1008 }
 0x3bb   :  { %v1064_v25 = vmul.f32 1.442695, %v1044_v51  ;;  %v1045_v56 = vsub.f32 %v3749_v35, %v1009_v55 }
 0x3bd   :  { %3225 = vpow2.f32 %v1064_v25  ;;  %v1066_v57 = vmul.f32 1.442695, %v1045_v56 }
 0x3bf   :  { %3227 = vpow2.f32 %v1066_v57 }
 0x3c0   :  { %v1012_v61 = vpop.xlane.xlu0 %1011 }
 0x3c1   :  { %v1046_v62 = vsub.f32 %v3756_v41, %v1012_v61 }
 0x3c2   :  { %v1015_v63 = vpop.xlane.xlu1 %1014 }
 0x3c3   :  { %v1068_v9 = vmul.f32 1.442695, %v1046_v62  ;;  %v1047_v10 = vsub.f32 %v3759_v44, %v1015_v63 }
 0x3c4   :  { %v1018_v0 = vpop.xlane.xlu0 %1017 }
 0x3c5   :  { %3229 = vpow2.f32 %v1068_v9  ;;  %v1070_v12 = vmul.f32 1.442695, %v1047_v10  ;;  %v1048_v13 = vsub.f32 %v3764_v48, %v1018_v0 }
 0x3c6   :  { %v1021_v32 = vpop.xlane.xlu1 %1020 }
 0x3c7   :  { %v3838_v58 = vpop.eup %3225  ;;  %3231 = vpow2.f32 %v1070_v12  ;;  %v1072_v35 = vmul.f32 1.442695, %v1048_v13  ;;  %v1049_v3 = vsub.f32 %v3769_v53, %v1021_v32 }
 0x3c8   :  { %v1024_v15 = vpop.xlane.xlu0 %1023  ;;  %v1100_v41 = vsel %vm991_vm4, %v3838_v58, 0.0 }
 0x3c9   :  { %v3843_v54 = vpop.eup %3227  ;;  %3233 = vpow2.f32 %v1072_v35  ;;  %v1074_v44 = vmul.f32 1.442695, %v1049_v3  ;;  %v1050_v6 = vsub.f32 %v3774_v59, %v1024_v15  ;;  %1101 = vadd.xlane.f32.xlu0 %v1100_v41 }
 0x3ca   :  { %v1027_v1 = vpop.xlane.xlu1 %1026  ;;  %v1103_v48 = vsel %vm991_vm4, %v3843_v54, 0.0 }
 0x3cb   :  { %3235 = vpow2.f32 %v1074_v44  ;;  %v1076_v18 = vmul.f32 1.442695, %v1050_v6  ;;  %v1051_v19 = vsub.f32 %v3779_v2, %v1027_v1  ;;  %1104 = vadd.xlane.f32.xlu1 %v1103_v48 }
 0x3cc   :  { %v1030_v53 = vpop.xlane.xlu0 %1029 }
 0x3cd   :  { %3237 = vpow2.f32 %v1076_v18  ;;  %v1078_v21 = vmul.f32 1.442695, %v1051_v19  ;;  %v1052_v14 = vsub.f32 %v3784_v11, %v1030_v53 }
 0x3ce   :  { %v1033_v22 = vpop.xlane.xlu1 %1032 }
 0x3cf   :  { %v3850_v27 = vpop.eup %3229  ;;  %3239 = vpow2.f32 %v1078_v21  ;;  %v1080_v59 = vmul.f32 1.442695, %v1052_v14  ;;  %v1053_v28 = vsub.f32 %v3789_v60, %v1033_v22 }
 0x3d0   :  { %v1036_v29 = vpop.xlane.xlu0 %1035  ;;  %v1106_v31 = vsel %vm991_vm4, %v3850_v27, 0.0 }
 0x3d1   :  { %v3855_v37 = vpop.eup %3231  ;;  %3241 = vpow2.f32 %v1080_v59  ;;  %v1082_v2 = vmul.f32 1.442695, %v1053_v28  ;;  %v1054_v52 = vsub.f32 %v3794_v4, %v1036_v29  ;;  %1107 = vadd.xlane.f32.xlu0 %v1106_v31 }
 0x3d2   :  { %v1109_v11 = vsel %vm991_vm4, %v3855_v37, 0.0  ;;  %v3036_v56 = vpop.permute.xlu1 %3035 }
 0x3d3   :  { %v3860_v20 = vpop.eup %3233  ;;  %3243 = vpow2.f32 %v1082_v2  ;;  %v1084_v39 = vmul.f32 1.442695, %v1054_v52  ;;  %1110 = vadd.xlane.f32.xlu1 %v1109_v11  ;;  %v3038_v18 = vunpack.i.h.bf16 %v3036_v56  ;;  %v3037_v19 = vunpack.i.l.bf16 %v3036_v56 }
 0x3d4   :  { %v1112_v60 = vsel %vm991_vm4, %v3860_v20, 0.0  ;;  %v3031_v0 = vpop.permute.xlu0 %3030 }
 0x3d5   :  { %v3864_v16 = vpop.eup %3235  ;;  %3245 = vpow2.f32 %v1084_v39  ;;  %1113 = vadd.xlane.f32.xlu0 %v1112_v60  ;;  %v3033_v15 = vunpack.i.h.bf16 %v3031_v0  ;;  %v3032_v41 = vunpack.i.l.bf16 %v3031_v0 }
 0x3d6   :  { %v1115_v40 = vsel %vm991_vm4, %v3864_v16, 0.0  ;;  %v3890_v57 = vpop.permute.xlu1 %3040 }
 0x3d7   :  { %v3868_v4 = vpop.eup %3237  ;;  %1116 = vadd.xlane.f32.xlu1 %v1115_v40  ;;  %v599_v53 = vpack.c.bf16 %v3033_v15, %v3032_v41  ;;  %v3043_v2 = vunpack.i.h.bf16 %v3890_v57  ;;  %v3042_v52 = vunpack.i.l.bf16 %v3890_v57 }
 0x3d8   :  { %v1118_v42 = vsel %vm991_vm4, %v3868_v4, 0.0 }
 0x3d9   :  { %v3872_v43 = vpop.eup %3239  ;;  %1119 = vadd.xlane.f32.xlu0 %v1118_v42 }
 0x3da   :  { %v1121_v45 = vsel %vm991_vm4, %v3872_v43, 0.0 }
 0x3db   :  { %v3876_v47 = vpop.eup %3241  ;;  %1122 = vadd.xlane.f32.xlu1 %v1121_v45  ;;  %v601_v45 = vpack.c.bf16 %v3043_v2, %v3042_v52 }
 0x3dc   :  { %v1124_v50 = vsel %vm991_vm4, %v3876_v47, 0.0 }
 0x3dd   :  { %v3880_v17 = vpop.eup %3243  ;;  %1125 = vadd.xlane.f32.xlu0 %v1124_v50 }
 0x3de   :  { %v1127_v51 = vsel %vm991_vm4, %v3880_v17, 0.0 }
 0x3df   :  { %v3884_v55 = vpop.eup %3245  ;;  %1128 = vadd.xlane.f32.xlu1 %v1127_v51 }
 0x3e0   :  { %v1130_v25 = vsel %vm991_vm4, %v3884_v55, 0.0 }
 0x3e1   :  { %1131 = vadd.xlane.f32.xlu0 %v1130_v25 }
 0x3f7   :  { %3050 = vrot.lane.b32.xlu0 %v3661_v8, %s3459_s14 }
 0x405   :  { %v1090_v12 = vpop.xlane.xlu0 %1089 }
 0x407   :  { %v1039_v61 = vpop.xlane.xlu1 %1038 }
 0x408   :  { %v1055_v62 = vsub.f32 %v3811_v34, %v1039_v61 }
 0x409   :  { %v1096_v13 = vpop.xlane.xlu0 %1095 }
 0x40a   :  { %v1086_v63 = vmul.f32 1.442695, %v1055_v62 }
 0x40b   :  { %v3899_v8 = vpop.permute.xlu1 %3045 }
 0x40c   :  { %3247 = vpow2.f32 %v1086_v63  ;;  %v3047_v56 = vunpack.i.l.bf16 %v3899_v8 }
 0x40d   :  { %3249 = vrcp.f32 %v1090_v12 }
 0x416   :  { %v3893_v9 = vpop.eup %3247 }
 0x417   :  { %v1133_v10 = vsel %vm991_vm4, %v3893_v9, 0.0  ;;  %v3250_v35 = vpop.eup %3249 }
 0x418   :  { %1134 = vadd.xlane.f32.xlu1 %v1133_v10  ;;  %v1152_v44 = vmul.f32 %v3250_v35, %v3808_v33  ;;  %v600_v33 = vpack.c.bf16 %v3038_v18, %v3037_v19 }
 0x429   :  { %3055 = vrot.lane.b32.xlu1 %v3657_v7, %s3459_s14 }
 0x43c   :  { %v1093_v32 = vpop.xlane.xlu1 %1092 }
 0x43d   :  { %3251 = vrcp.f32 %v1093_v32 }
 0x43e   :  { %3253 = vrcp.f32 %v1096_v13 }
 0x440   :  { %v1099_v34 = vpop.xlane.xlu1 %1098 }
 0x441   :  { %3255 = vrcp.f32 %v1099_v34 }
 0x447   :  { %v3252_v3 = vpop.eup %3251 }
 0x448   :  { %v1153_v6 = vmul.f32 %v3252_v3, %v3825_v46  ;;  %v3254_v7 = vpop.eup %3253 }
 0x449   :  { %v1154_v21 = vmul.f32 %v3254_v7, %v3815_v38 }
 0x44a   :  { %v1168_v1 = vpack.c.bf16 %v1153_v6, %v1152_v44 }
 0x44b   :  { %v3256_v48 = vpop.eup %3255 }
 0x44c   :  { %v1155_v14 = vmul.f32 %v3256_v48, %v3829_v49  ;;  %2885 = vmatmul.mubr.msk.bf16.vlgmr.msra.gmra.mrb[16].mxu1 %vm991_vm4, %v1168_v1 }
 0x44d   :  { %2895 = vmatpush3.bf16.msra.mxu1 %v599_v53  ;;  %2896 = vmatprep.mubr.msk.bf16.mxu1 %vm3457_vm0, %v3456_v5 }
 0x44e   :  { %v1169_v22 = vpack.c.bf16 %v1155_v14, %v1154_v21  ;;  %2906 = vmatprep.subr.bf16.mxu1 %v3456_v5 }
 0x450   :  { %2891 = vmatmul.mubr.msk.bf16.vlgmr.msra.gmra.mrb[28].mxu0 %vm991_vm4, %v1169_v22 }
 0x451   :  { %2901 = vmatpush3.bf16.msra.mxu0 %v600_v33  ;;  %2902 = vmatprep.mubr.msk.bf16.mxu0 %vm3457_vm0, %v3456_v5 }
 0x452   :  { %2912 = vmatprep.subr.bf16.mxu0 %v3456_v5 }
 0x456   :  { %v1102_v38 = vpop.xlane.xlu0 %1101 }
 0x457   :  { %3257 = vrcp.f32 %v1102_v38 }
 0x458   :  { %v1105_v46 = vpop.xlane.xlu1 %1104 }
 0x459   :  { %3259 = vrcp.f32 %v1105_v46 }
 0x45e   :  { %v1108_v49 = vpop.xlane.xlu0 %1107 }
 0x45f   :  { %3261 = vrcp.f32 %v1108_v49 }
 0x460   :  { %v1111_v59 = vpop.xlane.xlu1 %1110 }
 0x461   :  { %v3258_v28 = vpop.eup %3257  ;;  %3263 = vrcp.f32 %v1111_v59 }
 0x462   :  { %v1114_v29 = vpop.xlane.xlu0 %1113  ;;  %v1156_v11 = vmul.f32 %v3258_v28, %v3838_v58 }
 0x463   :  { %v3260_v31 = vpop.eup %3259  ;;  %3265 = vrcp.f32 %v1114_v29 }
 0x464   :  { %v1157_v39 = vmul.f32 %v3260_v31, %v3843_v54  ;;  %v1117_v60 = vpop.xlane.xlu1 %1116  ;;  %v3048_v54 = vunpack.i.h.bf16 %v3899_v8 }
 0x465   :  { %3267 = vrcp.f32 %v1117_v60 }
 0x466   :  { %v1120_v40 = vpop.xlane.xlu0 %1119  ;;  %v1170_v42 = vpack.c.bf16 %v1157_v39, %v1156_v11  ;;  %v602_v13 = vpack.c.bf16 %v3048_v54, %v3047_v56 }
 0x467   :  { %3269 = vrcp.f32 %v1120_v40 }
 0x468   :  { %2897 = vmatmul.mubr.msk.bf16.vlgmr.msra.gmra.mrb[20].mxu1 %vm991_vm4, %v1170_v42  ;;  %v1123_v50 = vpop.xlane.xlu1 %1122 }
 0x469   :  { %v3262_v51 = vpop.eup %3261  ;;  %3271 = vrcp.f32 %v1123_v50  ;;  %2907 = vmatpush3.bf16.msra.mxu1 %v601_v45  ;;  %2908 = vmatprep.mubr.msk.bf16.mxu1 %vm3457_vm0, %v3456_v5 }
 0x46a   :  { %v1126_v25 = vpop.xlane.xlu0 %1125  ;;  %2918 = vmatprep.subr.bf16.mxu1 %v3456_v5  ;;  %v1158_v57 = vmul.f32 %v3262_v51, %v3850_v27 }
 0x46b   :  { %v3264_v58 = vpop.eup %3263  ;;  %3273 = vrcp.f32 %v1126_v25 }
 0x46c   :  { %v1159_v61 = vmul.f32 %v3264_v58, %v3855_v37  ;;  %v1129_v62 = vpop.xlane.xlu1 %1128 }
 0x46d   :  { %v3266_v63 = vpop.eup %3265  ;;  %3275 = vrcp.f32 %v1129_v62  ;;  %v3122_v62 = vld [vmem:[%s4109_s5 + $0x8] sm:$0xff]  }
 0x46e   :  { %v1132_v10 = vpop.xlane.xlu0 %1131  ;;  %v1171_v0 = vpack.c.bf16 %v1159_v61, %v1158_v57  ;;  %v1160_v32 = vmul.f32 %v3266_v63, %v3860_v20  ;;  %v3121_v61 = vld [vmem:[%s4109_s5] sm:$0xff]  }
 0x46f   :  { %v3268_v12 = vpop.eup %3267  ;;  %3277 = vrcp.f32 %v1132_v10 }
 0x470   :  { %v1161_v34 = vmul.f32 %v3268_v12, %v3864_v16  ;;  %2903 = vmatmul.mubr.msk.bf16.vlgmr.msra.gmra.mrb[32].mxu0 %vm991_vm4, %v1171_v0 }
 0x471   :  { %v3270_v35 = vpop.eup %3269  ;;  %2913 = vmatpush3.bf16.msra.mxu0 %v602_v13  ;;  %2914 = vmatprep.mubr.msk.bf16.mxu0 %vm3457_vm0, %v3456_v5 }
 0x472   :  { %v3051_v27 = vpop.permute.xlu0 %3050  ;;  %v1172_v37 = vpack.c.bf16 %v1161_v34, %v1160_v32  ;;  %2924 = vmatprep.subr.bf16.mxu0 %v3456_v5  ;;  %v1162_v41 = vmul.f32 %v3270_v35, %v3868_v4  ;;  %v3123_v32 = vld [vmem:[%s4109_s5 + $0x10] sm:$0xff]  }
 0x473   :  { %v3272_v8 = vpop.eup %3271  ;;  %v3053_v3 = vunpack.i.h.bf16 %v3051_v27  ;;  %v3052_v15 = vunpack.i.l.bf16 %v3051_v27 }
 0x474   :  { %v1163_v20 = vmul.f32 %v3272_v8, %v3872_v43  ;;  %2909 = vmatmul.mubr.msk.bf16.vlgmr.msra.gmra.mrb[24].mxu1 %vm991_vm4, %v1172_v37  ;;  %v3124_v37 = vld [vmem:[%s4109_s5 + $0x18] sm:$0xff]   ;;  %v3125_v8 = vld [vmem:[%s4109_s5 + $0x20] sm:$0xff]  }
 0x475   :  { %v3274_v16 = vpop.eup %3273  ;;  %v603_v44 = vpack.c.bf16 %v3053_v3, %v3052_v15  ;;  %2920 = vmatprep.mubr.msk.bf16.mxu1 %vm3457_vm0, %v3456_v5  ;;  %v3126_v3 = vld [vmem:[%s4109_s5 + $0x28] sm:$0xff]   ;;  %v3127_v15 = vld [vmem:[%s4109_s5 + $0x30] sm:$0xff]  }
 0x476   :  { %v1173_v6 = vpack.c.bf16 %v1163_v20, %v1162_v41  ;;  %v1164_v1 = vmul.f32 %v3274_v16, %v3876_v47  ;;  %v3128_v41 = vld [vmem:[%s4109_s5 + $0x38] sm:$0xff]  }
 0x477   :  { %v3276_v7 = vpop.eup %3275  ;;  %2919 = vmatpush3.bf16.msra.mxu1 %v603_v44 }
 0x478   :  { %v1165_v48 = vmul.f32 %v3276_v7, %v3880_v17  ;;  %2915 = vmatmul.mubr.msk.bf16.vlgmr.msra.gmra.mrb[36].mxu0 %vm991_vm4, %v1173_v6  ;;  %2930 = vmatprep.subr.bf16.mxu1 %v3121_v61 }
 0x479   :  { %2926 = vmatprep.mubr.msk.bf16.mxu0 %vm3457_vm0, %v3456_v5  ;;  %v3278_v14 = vpop.eup %3277 }
 0x47a   :  { %v1174_v4 = vpack.c.bf16 %v1165_v48, %v1164_v1  ;;  %v1166_v17 = vmul.f32 %v3278_v14, %v3884_v55 }
 0x47c   :  { %2921 = vmatmul.mubr.msk.bf16.vlgmr.msra.gmra.mrb[28].mxu1 %vm991_vm4, %v1174_v4 }
 0x47d   :  { %2931 = vmatpush3.bf16.msra.mxu1 %v3121_v61  ;;  %v3321_v61 = vld [vmem:[#allocation2] sm:$0xff] }
 0x47e   :  { %2932 = vmatprep.subr.bf16.mxu1 %v3122_v62 }
 0x481   :  { %2933 = vmatpush3.bf16.msra.mxu1 %v3122_v62 }
 0x482   :  { %2934 = vmatprep.subr.bf16.mxu1 %v3123_v32 }
 0x485   :  { %2935 = vmatpush3.bf16.msra.mxu1 %v3123_v32  ;;  %v3323_v32 = vld [vmem:[#allocation2 + $0x18] sm:$0xff] }
 0x486   :  { %2936 = vmatprep.subr.bf16.mxu1 %v3124_v37 }
 0x489   :  { %2937 = vmatpush3.bf16.msra.mxu1 %v3124_v37 }
 0x48a   :  { %2938 = vmatprep.subr.bf16.mxu1 %v3125_v8 }
 0x48d   :  { %2939 = vmatpush3.bf16.msra.mxu1 %v3125_v8  ;;  %v3324_v8 = vld [vmem:[#allocation2 + $0x10] sm:$0xff] }
 0x48e   :  { %2940 = vmatprep.subr.bf16.mxu1 %v3126_v3 }
 0x491   :  { %2941 = vmatpush3.bf16.msra.mxu1 %v3126_v3 }
 0x492   :  { %2942 = vmatprep.subr.bf16.mxu1 %v3127_v15 }
 0x495   :  { %2943 = vmatpush3.bf16.msra.mxu1 %v3127_v15 }
 0x496   :  { %2944 = vmatprep.subr.bf16.mxu1 %v3128_v41 }
 0x499   :  { %2945 = vmatpush3.bf16.msra.mxu1 %v3128_v41  ;;  %v3129_v41 = vld [vmem:[#allocation7] ss:$16 sps:$4 sm:$0xff]  }
 0x4a5   :  { %v1135_v43 = vpop.xlane.xlu1 %1134 }
 0x4a6   :  { %3279 = vrcp.f32 %v1135_v43 }
 0x4a9   :  { %v3056_v18 = vpop.permute.xlu1 %3055 }
 0x4aa   :  { %v3058_v19 = vunpack.i.h.bf16 %v3056_v18  ;;  %v3057_v53 = vunpack.i.l.bf16 %v3056_v18 }
 0x4ac   :  { %v604_v21 = vpack.c.bf16 %v3058_v19, %v3057_v53 }
 0x4ae   :  { %2925 = vmatpush3.bf16.msra.mxu0 %v604_v21 }
 0x4b0   :  { %v3280_v47 = vpop.eup %3279 }
 0x4b1   :  { %v1167_v22 = vmul.f32 %v3280_v47, %v3893_v9 }
 0x4b3   :  { %v1175_v33 = vpack.c.bf16 %v1167_v22, %v1166_v17 }
 0x4b5   :  { %2927 = vmatmul.mubr.msk.bf16.vlgmr.msra.gmra.mrb[40].mxu0 %vm991_vm4, %v1175_v33 }
 0x4b6   :  { %2038 = vmatprep.mubr.bf16.mxu0 %v3455_v30 }
 0x51f   :  { %v3946_v5 = vpop.f32.mrb[16].mxu1 }
 0x520   :  { %v2886_v38 = vpop.f32.mrb[17].mxu1 }
 0x521   :  { %v3948_v46 = vpop.f32.mrb[18].mxu1 }
 0x522   :  { %v2887_v49 = vpop.f32.mrb[19].mxu1 }
 0x523   :  { %v3950_v59 = vpop.f32.mrb[28].mxu0 }
 0x524   :  { %v2892_v28 = vpop.f32.mrb[29].mxu0 }
 0x525   :  { %v3952_v29 = vpop.f32.mrb[30].mxu0 }
 0x526   :  { %v2893_v31 = vpop.f32.mrb[31].mxu0 }
 0x53b   :  { %v1301_v55 = vpop.f32.mrb[20].mxu1 }
 0x53c   :  { %v2898_v2 = vpop.f32.mrb[21].mxu1 }
 0x53d   :  { %v1304_v9 = vpop.f32.mrb[22].mxu1 }
 0x53e   :  { %v3059_v52 = vpack.i.bf16 %v1304_v9, %v1301_v55  ;;  %v2899_v11 = vpop.f32.mrb[23].mxu1 }
 0x540   :  { %3060 = vrot.lane.b32.xlu0 %v3059_v52, %s3459_s14 }
 0x543   :  { %v1345_v39 = vpop.f32.mrb[32].mxu0 }
 0x544   :  { %v2904_v60 = vpop.f32.mrb[33].mxu0 }
 0x545   :  { %v1348_v40 = vpop.f32.mrb[34].mxu0 }
 0x546   :  { %v3064_v42 = vpack.i.bf16 %v1348_v40, %v1345_v39  ;;  %v2905_v45 = vpop.f32.mrb[35].mxu0 }
 0x547   :  { %v1389_v50 = vpop.f32.mrb[24].mxu1 }
 0x548   :  { %3065 = vrot.lane.b32.xlu1 %v3064_v42, %s3459_s14  ;;  %v2910_v51 = vpop.f32.mrb[25].mxu1 }
 0x549   :  { %v1392_v25 = vpop.f32.mrb[26].mxu1 }
 0x54a   :  { %v3069_v58 = vpack.i.bf16 %v1392_v25, %v1389_v50  ;;  %v2911_v54 = vpop.f32.mrb[27].mxu1 }
 0x54b   :  { %v1433_v56 = vpop.f32.mrb[36].mxu0 }
 0x54c   :  { %v2916_v57 = vpop.f32.mrb[37].mxu0  ;;  %3070 = vrot.lane.b32.xlu0 %v3069_v58, %s3453_s9 }
 0x54d   :  { %v1436_v63 = vpop.f32.mrb[38].mxu0 }
 0x54e   :  { %v3074_v10 = vpack.i.bf16 %v1436_v63, %v1433_v56  ;;  %v2917_v0 = vpop.f32.mrb[39].mxu0 }
 0x54f   :  { %v1477_v12 = vpop.f32.mrb[28].mxu1  ;;  %v3322_v0 = vld [vmem:[#allocation2 + $0x8] sm:$0xff] }
 0x550   :  { %3075 = vrot.lane.b32.xlu1 %v3074_v10, %s3453_s9  ;;  %v2922_v13 = vpop.f32.mrb[29].mxu1 }
 0x551   :  { %v1480_v34 = vpop.f32.mrb[30].mxu1 }
 0x552   :  { %v3079_v35 = vpack.i.bf16 %v1480_v34, %v1477_v12  ;;  %v2923_v27 = vpop.f32.mrb[31].mxu1 }
 0x554   :  { %3080 = vrot.lane.b32.xlu0 %v3079_v35, %s3458_s4 }
 0x588   :  { %v1521_v20 = vpop.f32.mrb[40].mxu0 }
 0x589   :  { %v2928_v16 = vpop.f32.mrb[41].mxu0 }
 0x58a   :  { %v1524_v44 = vpop.f32.mrb[42].mxu0  ;;  %v3132_v16 = vld [vmem:[#allocation7 + $0x8] ss:$16 sps:$4 sm:$0xff]  }
 0x58b   :  { %v3084_v6 = vpack.i.bf16 %v1524_v44, %v1521_v20  ;;  %v2929_v7 = vpop.f32.mrb[43].mxu0  ;;  %v3131_v20 = vld [vmem:[#allocation7 + $0x4] ss:$16 sps:$4 sm:$0xff]   ;;  %v3134_v44 = vld [vmem:[#allocation7 + $0xc] ss:$16 sps:$4 sm:$0xff]  }
 0x58c   :  { %2006 = vmatprep.subr.bf16.mxu0 %v3131_v20  ;;  %2059 = vmatprep.subr.bf16.mxu1 %v3134_v44  ;;  %v3140_v7 = vld [vmem:[#allocation7 + $0x2c] ss:$16 sps:$4 sm:$0xff]  }
 0x58d   :  { %3085 = vrot.lane.b32.xlu1 %v3084_v6, %s3458_s4  ;;  %2007 = vmatpush1.bf16.msra.mxu0 %v3129_v41  ;;  %v3137_v6 = vld [vmem:[#allocation7 + $0x24] ss:$16 sps:$4 sm:$0xff]  }
 0x58e   :  { %2008 = vmatprep.subr.bf16.mxu0 %v3137_v6 }
 0x5b2   :  { %v3061_v1 = vpop.permute.xlu0 %3060 }
 0x5b3   :  { %v3063_v4 = vunpack.i.h.bf16 %v3061_v1  ;;  %v3062_v43 = vunpack.i.l.bf16 %v3061_v1  ;;  %v3135_v1 = vld [vmem:[#allocation7 + $0x20] ss:$16 sps:$4 sm:$0xff]  }
 0x5b4   :  { %2009 = vmatpush1.bf16.msra.mxu0 %v3135_v1 }
 0x5b5   :  { %v1577_v21 = vsel %vm614_vm1, %v3948_v46, %v3063_v4  ;;  %v1576_v14 = vsel %vm614_vm1, %v3946_v5, %v3062_v43  ;;  %v3143_v4 = vld [vmem:[#allocation7 + $0x44] ss:$16 sps:$4 sm:$0xff]   ;;  %v3146_v43 = vld [vmem:[#allocation7 + $0x4c] ss:$16 sps:$4 sm:$0xff]  }
 0x5b6   :  { %2010 = vmatprep.subr.bf16.mxu0 %v3143_v4 }
 0x5ba   :  { %v3066_v31 = vpop.permute.xlu1 %3065 }
 0x5bb   :  { %v3068_v2 = vunpack.i.h.bf16 %v3066_v31  ;;  %v3067_v9 = vunpack.i.l.bf16 %v3066_v31  ;;  %v3162_v31 = vld [vmem:[#allocation7 + $0xa8] ss:$16 sps:$4 sm:$0xff]  }
 0x5bd   :  { %v1579_v5 = vsel %vm614_vm1, %v3952_v29, %v3068_v2  ;;  %v1578_v39 = vsel %vm614_vm1, %v3950_v59, %v3067_v9  ;;  %v2630_v29 = vld [vmem:[%s4110_s6] ss:$0 sm:$0xff]  ;;  %v3167_v2 = vld [vmem:[#allocation7 + $0xc4] ss:$16 sps:$4 sm:$0xff]   ;;  %v3170_v9 = vld [vmem:[#allocation7 + $0xcc] ss:$16 sps:$4 sm:$0xff]  }
 0x5be   :  { %v3071_v48 = vpop.permute.xlu0 %3070 }
 0x5bf   :  { %v3073_v18 = vunpack.i.h.bf16 %v3071_v48  ;;  %v3072_v19 = vunpack.i.l.bf16 %v3071_v48  ;;  %v3138_v48 = vld [vmem:[#allocation7 + $0x28] ss:$16 sps:$4 sm:$0xff]  }
 0x5c1   :  { %v1582_v22 = vsel %vm1580_vm5, %v1577_v21, %v3073_v18  ;;  %v1581_v33 = vsel %vm1580_vm5, %v1576_v14, %v3072_v19  ;;  %v3141_v18 = vld [vmem:[#allocation7 + $0x40] ss:$16 sps:$4 sm:$0xff]   ;;  %v3144_v19 = vld [vmem:[#allocation7 + $0x48] ss:$16 sps:$4 sm:$0xff]   ;;  %v3152_v21 = vld [vmem:[#allocation7 + $0x6c] ss:$16 sps:$4 sm:$0xff]  }
 0x5c2   :  { %v3076_v55 = vpop.permute.xlu1 %3075  ;;  %2011 = vmatpush1.bf16.msra.mxu0 %v3141_v18  ;;  %v3147_v14 = vld [vmem:[#allocation7 + $0x60] ss:$16 sps:$4 sm:$0xff]  }
 0x5c3   :  { %v3078_v46 = vunpack.i.h.bf16 %v3076_v55  ;;  %v3077_v52 = vunpack.i.l.bf16 %v3076_v55  ;;  %v3164_v55 = vld [vmem:[#allocation7 + $0xac] ss:$16 sps:$4 sm:$0xff]   ;;  %v2639_v18 = vld [vmem:[%s4111_s7] ss:$0 sm:$0xff] }
 0x5c5   :  { %v1584_v42 = vsel %vm1580_vm5, %v1579_v5, %v3078_v46  ;;  %v1583_v45 = vsel %vm1580_vm5, %v1578_v39, %v3077_v52  ;;  %v3165_v46 = vld [vmem:[#allocation7 + $0xc0] ss:$16 sps:$4 sm:$0xff]   ;;  %v3168_v52 = vld [vmem:[#allocation7 + $0xc8] ss:$16 sps:$4 sm:$0xff]   ;;  %v3176_v5 = vld [vmem:[#allocation7 + $0xec] ss:$16 sps:$4 sm:$0xff]  }
 0x5c6   :  { %v3081_v53 = vpop.permute.xlu0 %3080  ;;  %v3171_v39 = vld [vmem:[#allocation7 + $0xe0] ss:$16 sps:$4 sm:$0xff]  }
 0x5c7   :  { %v3083_v47 = vunpack.i.h.bf16 %v3081_v53  ;;  %v3082_v17 = vunpack.i.l.bf16 %v3081_v53  ;;  %v3149_v53 = vld [vmem:[#allocation7 + $0x64] ss:$16 sps:$4 sm:$0xff]  }
 0x5c8   :  { %2012 = vmatprep.subr.bf16.mxu0 %v3149_v53 }
 0x5c9   :  { %v1586_v38 = vsel %vm1585_vm6, %v1581_v33, %v3082_v17  ;;  %v1587_v49 = vsel %vm1585_vm6, %v1582_v22, %v3083_v47  ;;  %v3150_v47 = vld [vmem:[#allocation7 + $0x68] ss:$16 sps:$4 sm:$0xff]   ;;  %2013 = vmatpush1.bf16.msra.mxu0 %v3147_v14  ;;  %v3155_v17 = vld [vmem:[#allocation7 + $0x84] ss:$16 sps:$4 sm:$0xff]   ;;  %v3158_v22 = vld [vmem:[#allocation7 + $0x8c] ss:$16 sps:$4 sm:$0xff]  }
 0x5ca   :  { %v1590_v28 = vpack.c.bf16 %v1587_v49, %v1586_v38  ;;  %v3153_v33 = vld [vmem:[#allocation7 + $0x80] ss:$16 sps:$4 sm:$0xff]   ;;  %v3156_v38 = vld [vmem:[#allocation7 + $0x88] ss:$16 sps:$4 sm:$0xff]   ;;  %2014 = vmatprep.subr.bf16.mxu0 %v3155_v17 }
 0x5cb   :  { %v3159_v49 = vld [vmem:[#allocation7 + $0xa0] ss:$16 sps:$4 sm:$0xff]  }
 0x5cc   :  { %2946 = vmatprep.mubr.bf16.mxu1 %v1590_v28  ;;  %v3161_v28 = vld [vmem:[#allocation7 + $0xa4] ss:$16 sps:$4 sm:$0xff]   ;;  %v2640_v17 = vld [vmem:[%s4112_s8] ss:$0 sm:$0xff] }
 0x5cd   :  { %2015 = vmatpush1.bf16.msra.mxu0 %v3153_v33 }
 0x5ce   :  { %2016 = vmatprep.subr.bf16.mxu0 %v3161_v28 }
 0x5d1   :  { %2017 = vmatpush1.bf16.msra.mxu0 %v3159_v49 }
 0x5d2   :  { %2018 = vmatprep.subr.bf16.mxu0 %v3167_v2  ;;  %v3179_v2 = vld [vmem:[#allocation8] sm:$0xff]  }
 0x5d5   :  { %2019 = vmatpush1.bf16.msra.mxu0 %v3165_v46 }
 0x5ff   :  { %v3086_v11 = vpop.permute.xlu1 %3085 }
 0x600   :  { %v3088_v60 = vunpack.i.h.bf16 %v3086_v11  ;;  %v3087_v40 = vunpack.i.l.bf16 %v3086_v11  ;;  %v3173_v11 = vld [vmem:[#allocation7 + $0xe4] ss:$16 sps:$4 sm:$0xff]  }
 0x601   :  { %2020 = vmatprep.subr.bf16.mxu0 %v3173_v11  ;;  %v3182_v11 = vld [vmem:[#allocation8 + $0xc8] sm:$0xff]  }
 0x602   :  { %v1589_v50 = vsel %vm1585_vm6, %v1584_v42, %v3088_v60  ;;  %v1588_v51 = vsel %vm1585_vm6, %v1583_v45, %v3087_v40  ;;  %v3174_v60 = vld [vmem:[#allocation7 + $0xe8] ss:$16 sps:$4 sm:$0xff]   ;;  %2021 = vmatpush1.bf16.msra.mxu0 %v3171_v39  ;;  %v3177_v40 = vld [vmem:[#allocation8 + $0x40] sm:$0xff]  }
 0x603   :  { %v1591_v25 = vpack.c.bf16 %v1589_v50, %v1588_v51  ;;  %v3178_v42 = vld [vmem:[#allocation8 + $0xc0] sm:$0xff]   ;;  %2758 = vmatprep.subr.bf16.mxu0 %v3177_v40  ;;  %v3183_v40 = vld [vmem:[#allocation8 + $0x8] sm:$0xff]  }
 0x605   :  { %2947 = vmatmul.mubr.bf16.vlgmr.msra.gmra.mrb[32].mxu1 %v1591_v25 }
 0x606   :  { %2091 = vmatprep.mubr.bf16.mxu1 %v3455_v30  ;;  %2060 = vmatpush1.bf16.msra.mxu1 %v3132_v16 }
 0x607   :  { %2061 = vmatprep.subr.bf16.mxu1 %v3140_v7 }
 0x60a   :  { %2062 = vmatpush1.bf16.msra.mxu1 %v3138_v48 }
 0x60b   :  { %2063 = vmatprep.subr.bf16.mxu1 %v3146_v43 }
 0x60e   :  { %2064 = vmatpush1.bf16.msra.mxu1 %v3144_v19 }
 0x60f   :  { %2065 = vmatprep.subr.bf16.mxu1 %v3152_v21 }
 0x612   :  { %2066 = vmatpush1.bf16.msra.mxu1 %v3150_v47 }
 0x613   :  { %2067 = vmatprep.subr.bf16.mxu1 %v3158_v22 }
 0x616   :  { %2068 = vmatpush1.bf16.msra.mxu1 %v3156_v38 }
 0x617   :  { %2069 = vmatprep.subr.bf16.mxu1 %v3164_v55 }
 0x61a   :  { %2070 = vmatpush1.bf16.msra.mxu1 %v3162_v31 }
 0x61b   :  { %2071 = vmatprep.subr.bf16.mxu1 %v3170_v9  ;;  %v3180_v9 = vld [vmem:[#allocation8 + $0x80] sm:$0xff]  }
 0x61e   :  { %2072 = vmatpush1.bf16.msra.mxu1 %v3168_v52  ;;  %v3181_v52 = vld [vmem:[#allocation8 + $0x48] sm:$0xff]  }
 0x61f   :  { %2073 = vmatprep.subr.bf16.mxu1 %v3176_v5 }
 0x622   :  { %2074 = vmatpush1.bf16.msra.mxu1 %v3174_v60 }
 0x623   :  { %2786 = vmatprep.subr.bf16.mxu1 %v3178_v42  ;;  %v3184_v42 = vld [vmem:[#allocation8 + $0x88] sm:$0xff]  }
 0x6d8   :  { %v2948_v58 = vpop.f32.mrb[32].mxu1 }
 0x6d9   :  { %v1697_v59 = vpop.f32.mrb[33].mxu1  ;;  %v1706_v35 = vadd.f32 %v2948_v58, %v2630_v29 }
 0x6da   :  { %v1698_v54 = vadd.f32 %v2630_v29, %v1697_v59  ;;  %v2949_v56 = vpop.f32.mrb[34].mxu1 }
 0x6db   :  { %v1700_v57 = vpop.f32.mrb[35].mxu1  ;;  %v1709_v10 = vadd.f32 %v2949_v56, %v2630_v29  ;;  %v4019_v3 = vadd.f32 %v3324_v8, %v1706_v35 }
 0x6dc   :  { %v4004_v62 = vadd.f32 %v3321_v61, %v1698_v54  ;;  %v1701_v63 = vadd.f32 %v2630_v29, %v1700_v57 }
 0x6dd   :  { %v4012_v34 = vadd.f32 %v3323_v32, %v1709_v10  ;;  %v1730_v15 = vmul.f32 %v4019_v3, %v4019_v3 }
 0x6de   :  { %v4006_v12 = vadd.f32 %v3322_v0, %v1701_v63  ;;  %1716 = vadd.xlane.f32.xlu0 %v4004_v62  ;;  %v1728_v13 = vmul.f32 %v4004_v62, %v4004_v62 }
 0x6df   :  { %v1731_v37 = vmul.f32 %v4012_v34, %v4012_v34 }
 0x6e0   :  { %1718 = vadd.xlane.f32.xlu1 %v4006_v12  ;;  %v1729_v27 = vmul.f32 %v4006_v12, %v4006_v12 }
 0x6e2   :  { %1732 = vadd.xlane.f32.xlu0 %v1728_v13 }
 0x6e4   :  { %1722 = vadd.xlane.f32.xlu1 %v4012_v34 }
 0x6e6   :  { %1734 = vadd.xlane.f32.xlu0 %v1729_v27 }
 0x6e8   :  { %1738 = vadd.xlane.f32.xlu1 %v1731_v37 }
 0x6ea   :  { %1720 = vadd.xlane.f32.xlu0 %v4019_v3 }
 0x6ee   :  { %1736 = vadd.xlane.f32.xlu0 %v1730_v15 }
 0x76b   :  { %v1717_v45 = vpop.xlane.xlu0 %1716 }
 0x76c   :  { %v1724_v50 = vmul.f32 0.0078125, %v1717_v45 }
 0x76d   :  { %v1719_v51 = vpop.xlane.xlu1 %1718 }
 0x76e   :  { %v1744_v29 = vmul.f32 %v1724_v50, %v1724_v50  ;;  %v1725_v58 = vmul.f32 0.0078125, %v1719_v51  ;;  %v1752_v1 = vsub.f32 %v4004_v62, %v1724_v50 }
 0x76f   :  { %v1733_v25 = vpop.xlane.xlu0 %1732 }
 0x770   :  { %v1740_v59 = vmul.f32 0.0078125, %v1733_v25  ;;  %v1745_v63 = vmul.f32 %v1725_v58, %v1725_v58  ;;  %v1753_v19 = vsub.f32 %v4006_v12, %v1725_v58  ;;  %v3185_v25 = vld [vmem:[#allocation8 + $0x50] sm:$0xff]  }
 0x771   :  { %v1723_v54 = vpop.xlane.xlu1 %1722  ;;  %v3187_v58 = vld [vmem:[#allocation8 + $0x10] sm:$0xff]  }
 0x772   :  { %v1748_v56 = vsub.f32 %v1740_v59, %v1744_v29  ;;  %v1727_v57 = vmul.f32 0.0078125, %v1723_v54  ;;  %v3186_v29 = vld [vmem:[#allocation8 + $0xd0] sm:$0xff]   ;;  %v3190_v54 = vld [vmem:[#allocation8 + $0xd8] sm:$0xff]  }
 0x773   :  { %v1735_v61 = vpop.xlane.xlu0 %1734  ;;  %v3188_v59 = vld [vmem:[#allocation8 + $0x90] sm:$0xff]  }
 0x774   :  { %v1756_v10 = vadd.f32 1e-05, %v1748_v56  ;;  %v1741_v0 = vmul.f32 0.0078125, %v1735_v61  ;;  %v1747_v32 = vmul.f32 %v1727_v57, %v1727_v57  ;;  %v1755_v22 = vsub.f32 %v4012_v34, %v1727_v57  ;;  %v3191_v56 = vld [vmem:[#allocation8 + $0x18] sm:$0xff]   ;;  %v3193_v61 = vld [vmem:[#allocation8 + $0x60] sm:$0xff]  }
 0x775   :  { %v1739_v13 = vpop.xlane.xlu1 %1738  ;;  %v3192_v57 = vld [vmem:[#allocation8 + $0x98] sm:$0xff]  }
 0x776   :  { %3281 = vrsqrt.f32 %v1756_v10  ;;  %v1749_v35 = vsub.f32 %v1741_v0, %v1745_v63  ;;  %v1743_v27 = vmul.f32 0.0078125, %v1739_v13  ;;  %v3194_v63 = vld [vmem:[#allocation8 + $0xe0] sm:$0xff]   ;;  %v3197_v13 = vld [vmem:[#allocation8 + $0x68] sm:$0xff]  }
 0x777   :  { %v1721_v37 = vpop.xlane.xlu0 %1720  ;;  %v3195_v10 = vld [vmem:[#allocation8 + $0x20] sm:$0xff]  }
 0x778   :  { %v1757_v8 = vadd.f32 1e-05, %v1749_v35  ;;  %v1751_v15 = vsub.f32 %v1743_v27, %v1747_v32  ;;  %v1726_v41 = vmul.f32 0.0078125, %v1721_v37  ;;  %v3196_v0 = vld [vmem:[#allocation8 + $0xa0] sm:$0xff]   ;;  %v3198_v32 = vld [vmem:[#allocation8 + $0xe8] sm:$0xff]   ;;  %v3201_v37 = vld [vmem:[#allocation8 + $0x70] sm:$0xff]  }
 0x779   :  { %v3199_v35 = vld [vmem:[#allocation8 + $0x28] sm:$0xff]  }
 0x77a   :  { %3283 = vrsqrt.f32 %v1757_v8  ;;  %v1759_v20 = vadd.f32 1e-05, %v1751_v15  ;;  %v1746_v44 = vmul.f32 %v1726_v41, %v1726_v41  ;;  %v1754_v31 = vsub.f32 %v4019_v3, %v1726_v41  ;;  %v3200_v27 = vld [vmem:[#allocation8 + $0xa8] sm:$0xff]   ;;  %v3202_v8 = vld [vmem:[#allocation8 + $0xf0] sm:$0xff]  }
 0x77b   :  { %v1737_v16 = vpop.xlane.xlu0 %1736  ;;  %v3203_v15 = vld [vmem:[#allocation8 + $0x30] sm:$0xff]  }
 0x77c   :  { %3285 = vrsqrt.f32 %v1759_v20  ;;  %v1742_v6 = vmul.f32 0.0078125, %v1737_v16  ;;  %v3204_v41 = vld [vmem:[#allocation8 + $0xb0] sm:$0xff]   ;;  %v3205_v20 = vld [vmem:[#allocation8 + $0x78] sm:$0xff]  }
 0x77d   :  { %v3206_v16 = vld [vmem:[#allocation8 + $0xf8] sm:$0xff]  }
 0x77e   :  { %v1750_v7 = vsub.f32 %v1742_v6, %v1746_v44  ;;  %v3207_v44 = vld [vmem:[#allocation8 + $0x38] sm:$0xff]  }
 0x77f   :  { %v3208_v6 = vld [vmem:[#allocation8 + $0xb8] sm:$0xff]  }
 0x780   :  { %v3282_v48 = vpop.eup %3281  ;;  %v1758_v4 = vadd.f32 1e-05, %v1750_v7  ;;  %v1824_v7 = vld [vmem:[%s4114_s10] sm:$0xf] }
 0x781   :  { %v1764_v43 = vmul.f32 %v3282_v48, %v1752_v1  ;;  %v1840_v1 = vsub.s32 3, %v3624_v23  ;;  %v1829_v48 = vrot.slane %v1824_v7, %v218_v24 }
 0x782   :  { %3287 = vrsqrt.f32 %v1758_v4  ;;  %v1837_v4 = vrot.slane %v1824_v7, %v226_v36 }
 0x783   :  { %v1775_v14 = vmul.f32 %v2639_v18, %v1764_v43  ;;  %v1833_v43 = vrot.slane %v1824_v7, %v222_v26 }
 0x784   :  { %v3284_v53 = vpop.eup %3283 }
 0x785   :  { %v1765_v21 = vmul.f32 %v3284_v53, %v1753_v19  ;;  %v1786_v38 = vadd.f32 %v2640_v17, %v1775_v14 }
 0x786   :  { %v3286_v47 = vpop.eup %3285 }
 0x787   :  { %v1776_v33 = vmul.f32 %v2639_v18, %v1765_v21  ;;  %v1767_v28 = vmul.f32 %v3286_v47, %v1755_v22 }
 0x789   :  { %v1787_v49 = vadd.f32 %v2640_v17, %v1776_v33  ;;  %v1778_v39 = vmul.f32 %v2639_v18, %v1767_v28 }
 0x78b   :  { %v1790_v55 = vpack.c.bf16 %v1787_v49, %v1786_v38  ;;  %v1789_v50 = vadd.f32 %v2640_v17, %v1778_v39 }
 0x78c   :  { %v3288_v46 = vpop.eup %3287 }
 0x78d   :  { %2039 = vmatmul.mubr.bf16.vlgmr.msra.gmra.mrb[44].mxu0 %v1790_v55  ;;  %2092 = vmatmul.mubr.bf16.vlgmr.msra.gmra.mrb[36].mxu1 %v1790_v55  ;;  %v1766_v5 = vmul.f32 %v3288_v46, %v1754_v31 }
 0x78e   :  { %2048 = vmatprep.mubr.bf16.mxu0 %v3455_v30  ;;  %2101 = vmatprep.mubr.bf16.mxu1 %v3455_v30  ;;  %v3189_v30 = vld [vmem:[#allocation8 + $0x58] sm:$0xff]  }
 0x78f   :  { %v1777_v60 = vmul.f32 %v2639_v18, %v1766_v5  ;;  %2759 = vmatpush3.bf16.msra.mxu0 %v3179_v2  ;;  %2787 = vmatpush3.bf16.msra.mxu1 %v3180_v9  ;;  %v1841_v18 = vrot.slane %v1824_v7, %v1840_v1 }
 0x790   :  { %2760 = vmatprep.subr.bf16.mxu0 %v3181_v52  ;;  %2788 = vmatprep.subr.bf16.mxu1 %v3182_v11 }
 0x791   :  { %v1788_v45 = vadd.f32 %v2640_v17, %v1777_v60 }
 0x793   :  { %v1791_v51 = vpack.c.bf16 %v1789_v50, %v1788_v45  ;;  %2761 = vmatpush3.bf16.msra.mxu0 %v3183_v40  ;;  %2789 = vmatpush3.bf16.msra.mxu1 %v3184_v42 }
 0x794   :  { %2762 = vmatprep.subr.bf16.mxu0 %v3185_v25  ;;  %2790 = vmatprep.subr.bf16.mxu1 %v3186_v29 }
 0x795   :  { %2049 = vmatmul.mubr.bf16.gmra.mrb[48].mxu0 %v1791_v51  ;;  %2102 = vmatmul.mubr.bf16.gmra.mrb[40].mxu1 %v1791_v51 }
 0x797   :  { %2763 = vmatpush3.bf16.msra.mxu0 %v3187_v58  ;;  %2791 = vmatpush3.bf16.msra.mxu1 %v3188_v59 }
 0x798   :  { %2764 = vmatprep.subr.bf16.mxu0 %v3189_v30  ;;  %2792 = vmatprep.subr.bf16.mxu1 %v3190_v54 }
 0x79b   :  { %2765 = vmatpush3.bf16.msra.mxu0 %v3191_v56  ;;  %2793 = vmatpush3.bf16.msra.mxu1 %v3192_v57 }
 0x79c   :  { %2766 = vmatprep.subr.bf16.mxu0 %v3193_v61  ;;  %2794 = vmatprep.subr.bf16.mxu1 %v3194_v63 }
 0x79f   :  { %2767 = vmatpush3.bf16.msra.mxu0 %v3195_v10  ;;  %2795 = vmatpush3.bf16.msra.mxu1 %v3196_v0 }
 0x7a0   :  { %2768 = vmatprep.subr.bf16.mxu0 %v3197_v13  ;;  %2796 = vmatprep.subr.bf16.mxu1 %v3198_v32 }
 0x7a3   :  { %2769 = vmatpush3.bf16.msra.mxu0 %v3199_v35  ;;  %2797 = vmatpush3.bf16.msra.mxu1 %v3200_v27 }
 0x7a4   :  { %2770 = vmatprep.subr.bf16.mxu0 %v3201_v37  ;;  %2798 = vmatprep.subr.bf16.mxu1 %v3202_v8 }
 0x7a7   :  { %2771 = vmatpush3.bf16.msra.mxu0 %v3203_v15  ;;  %2799 = vmatpush3.bf16.msra.mxu1 %v3204_v41 }
 0x7a8   :  { %2772 = vmatprep.subr.bf16.mxu0 %v3205_v20  ;;  %2800 = vmatprep.subr.bf16.mxu1 %v3206_v16 }
 0x7ab   :  { %2773 = vmatpush3.bf16.msra.mxu0 %v3207_v44  ;;  %2801 = vmatpush3.bf16.msra.mxu1 %v3208_v6 }
 0x860   :  { %v2040_v19 = vpop.f32.mrb[44].mxu0  ;;  %v2093_v53 = vpop.f32.mrb[36].mxu1 }
 0x861   :  { %v2041_v21 = vadd.f32 %v2040_v19, %v1829_v48  ;;  %v2094_v14 = vadd.f32 %v2093_v53, %v1837_v4  ;;  %v2042_v47 = vpop.f32.mrb[45].mxu0  ;;  %v2095_v17 = vpop.f32.mrb[37].mxu1 }
 0x862   :  { %v2043_v22 = vadd.f32 %v2042_v47, %v1833_v43  ;;  %v2096_v33 = vadd.f32 %v2095_v17, %v1841_v18  ;;  %v2044_v38 = vpop.f32.mrb[46].mxu0  ;;  %v2097_v49 = vpop.f32.mrb[38].mxu1 }
 0x863   :  { %v2128_v28 = vmul.f32 0.70710677, %v2041_v21  ;;  %v2130_v31 = vmul.f32 0.70710677, %v2094_v14  ;;  %v2045_v36 = vadd.f32 %v2044_v38, %v1829_v48  ;;  %v4046_v2 = vadd.f32 %v2097_v49, %v1837_v4  ;;  %v2046_v23 = vpop.f32.mrb[47].mxu0  ;;  %v2099_v26 = vpop.f32.mrb[39].mxu1 }
 0x864   :  { %v2129_v24 = vmul.f32 0.70710677, %v2043_v22  ;;  %v2131_v55 = vmul.f32 0.70710677, %v2096_v33  ;;  %v2047_v9 = vadd.f32 %v2046_v23, %v1833_v43  ;;  %v4048_v46 = vadd.f32 %v2099_v26, %v1841_v18 }
 0x865   :  { %3289 = verf.f32 %v2128_v28  ;;  %v2132_v52 = vmul.f32 0.70710677, %v2045_v36  ;;  %v2134_v11 = vmul.f32 0.70710677, %v4046_v2  ;;  %v2112_v15 = vmul.f32 0.5, %v2041_v21 }
 0x866   :  { %3291 = verf.f32 %v2130_v31  ;;  %v2133_v5 = vmul.f32 0.70710677, %v2047_v9  ;;  %v2135_v60 = vmul.f32 0.70710677, %v4048_v46  ;;  %v2114_v41 = vmul.f32 0.5, %v2094_v14 }
 0x867   :  { %3293 = verf.f32 %v2129_v24  ;;  %v2113_v6 = vmul.f32 0.5, %v2043_v22  ;;  %v2118_v17 = vmul.f32 0.5, %v4046_v2  ;;  %v2117_v22 = vmul.f32 0.5, %v2047_v9 }
 0x868   :  { %3295 = verf.f32 %v2131_v55  ;;  %v2050_v39 = vpop.f32.mrb[48].mxu0  ;;  %v2103_v42 = vpop.f32.mrb[40].mxu1 }
 0x869   :  { %3297 = verf.f32 %v2132_v52  ;;  %v4052_v40 = vadd.f32 %v2050_v39, %v1829_v48  ;;  %v2052_v45 = vpop.f32.mrb[49].mxu0  ;;  %v4054_v50 = vadd.f32 %v2103_v42, %v1837_v4  ;;  %v2105_v25 = vpop.f32.mrb[41].mxu1 }
 0x86a   :  { %3299 = verf.f32 %v2134_v11  ;;  %v4056_v51 = vadd.f32 %v2052_v45, %v1833_v43  ;;  %v2054_v29 = vpop.f32.mrb[50].mxu0  ;;  %v4059_v59 = vadd.f32 %v2105_v25, %v1841_v18  ;;  %v2107_v30 = vpop.f32.mrb[42].mxu1 }
 0x86b   :  { %3301 = verf.f32 %v2133_v5  ;;  %v2136_v58 = vmul.f32 0.70710677, %v4052_v40  ;;  %v2056_v54 = vpop.f32.mrb[51].mxu0  ;;  %v2138_v56 = vmul.f32 0.70710677, %v4054_v50  ;;  %v2109_v57 = vpop.f32.mrb[43].mxu1  ;;  %v2055_v10 = vadd.f32 %v2054_v29, %v1829_v48 }
 0x86c   :  { %3303 = verf.f32 %v2135_v60  ;;  %v2137_v61 = vmul.f32 0.70710677, %v4056_v51  ;;  %v2139_v63 = vmul.f32 0.70710677, %v4059_v59  ;;  %v4064_v0 = vadd.f32 %v2107_v30, %v1837_v4 }
 0x86d   :  { %3305 = verf.f32 %v2136_v58  ;;  %v4066_v13 = vadd.f32 %v2056_v54, %v1833_v43  ;;  %v2140_v27 = vmul.f32 0.70710677, %v2055_v10  ;;  %v4068_v37 = vadd.f32 %v2109_v57, %v1841_v18 }
 0x86e   :  { %3307 = verf.f32 %v2138_v56  ;;  %v2142_v20 = vmul.f32 0.70710677, %v4064_v0  ;;  %v2115_v4 = vmul.f32 0.5, %v2096_v33  ;;  %v2116_v43 = vmul.f32 0.5, %v2045_v36 }
 0x86f   :  { %v3290_v32 = vpop.eup %3289  ;;  %3309 = verf.f32 %v2137_v61  ;;  %v2141_v7 = vmul.f32 0.70710677, %v4066_v13  ;;  %v2143_v21 = vmul.f32 0.70710677, %v4068_v37  ;;  %v2119_v36 = vmul.f32 0.5, %v4048_v46 }
 0x870   :  { %v3292_v35 = vpop.eup %3291  ;;  %3311 = verf.f32 %v2139_v63  ;;  %v2160_v44 = vadd.f32 1.0, %v3290_v32  ;;  %v2120_v54 = vmul.f32 0.5, %v4052_v40  ;;  %v2122_v57 = vmul.f32 0.5, %v4054_v50 }
 0x871   :  { %v3294_v8 = vpop.eup %3293  ;;  %3313 = verf.f32 %v2140_v27  ;;  %v2162_v48 = vadd.f32 1.0, %v3292_v35  ;;  %v2124_v63 = vmul.f32 0.5, %v2055_v10  ;;  %v2121_v27 = vmul.f32 0.5, %v4056_v51 }
 0x872   :  { %v3296_v16 = vpop.eup %3295  ;;  %3315 = verf.f32 %v2142_v20  ;;  %v2161_v18 = vadd.f32 1.0, %v3294_v8  ;;  %v2176_v28 = vmul.f32 %v2160_v44, %v2112_v15  ;;  %v2126_v8 = vmul.f32 0.5, %v4064_v0 }
 0x873   :  { %v3298_v1 = vpop.eup %3297  ;;  %3317 = verf.f32 %v2141_v7  ;;  %v2163_v47 = vadd.f32 1.0, %v3296_v16  ;;  %v2178_v33 = vmul.f32 %v2162_v48, %v2114_v41  ;;  %v2125_v41 = vmul.f32 0.5, %v4066_v13 }
 0x874   :  { %v3300_v19 = vpop.eup %3299  ;;  %v2164_v53 = vadd.f32 1.0, %v3298_v1  ;;  %3319 = verf.f32 %v2143_v21  ;;  %v2177_v52 = vmul.f32 %v2161_v18, %v2113_v6  ;;  %v2123_v10 = vmul.f32 0.5, %v4059_v59  ;;  %v2673_v59 = vld [vmem:[%s4116_s12] ss:$0 sm:$0xff]  ;;  %s3461_s12 = smov [#allocation10]  }
 0x875   :  { %v3302_v14 = vpop.eup %3301  ;;  %v2166_v38 = vadd.f32 1.0, %v3300_v19  ;;  %v2179_v60 = vmul.f32 %v2163_v47, %v2115_v4  ;;  %v2127_v1 = vmul.f32 0.5, %v4068_v37  ;;  %s2574_s14 = sshll.u32 %s3461_s12, 4  ;;  %s2575_s14 = int_to_ptr.vmem [resolvable:$true] %s2574_s14 }
 0x876   :  { %v3304_v49 = vpop.eup %3303  ;;  %v2180_v31 = vmul.f32 %v2164_v53, %v2116_v43  ;;  %v2165_v24 = vadd.f32 1.0, %v3302_v14  ;;  %s3413_s15 = scalar_lea.vmem %s2575_s14, 512  ;;  %p3418_p5 = scmp.lt.s32.totalorder %s2575_s14, %s2575_s14 }
 0x877   :  { %v2182_v55 = vmul.f32 %v2166_v38, %v2118_v17  ;;  %v2167_v23 = vadd.f32 1.0, %v3304_v49  ;;  %v3306_v26 = vpop.eup %3305  ;;  %p3414_p4 = scmp.ne.s32.totalorder %s2575_s14, %s3413_s15  ;;  %p3419_p6 = scmp.lt.s32.totalorder %s3413_s15, %s3413_s15 }
 0x878   :  { %v2192_v11 = vpack.c.bf16 %v2180_v31, %v2176_v28  ;;  %v2181_v5 = vmul.f32 %v2165_v24, %v2117_v22  ;;  %v3308_v39 = vpop.eup %3307  ;;  %v2168_v29 = vadd.f32 1.0, %v3306_v26 }
 0x879   :  { %v2194_v42 = vpack.c.bf16 %v2182_v55, %v2178_v33  ;;  %v2183_v2 = vmul.f32 %v2167_v23, %v2119_v36  ;;  %v3310_v45 = vpop.eup %3309  ;;  %v2170_v56 = vadd.f32 1.0, %v3308_v39  ;;  %p3420_p7 = por %p3419_p6, %p3418_p5 }
 0x87a   :  { %v2193_v9 = vpack.c.bf16 %v2181_v5, %v2177_v52  ;;  %v3312_v25 = vpop.eup %3311  ;;  %v2169_v61 = vadd.f32 1.0, %v3310_v45  ;;  %v2184_v40 = vmul.f32 %v2168_v29, %v2120_v54 }
 0x87b   :  { %v2195_v58 = vpack.c.bf16 %v2183_v2, %v2179_v60  ;;  %v3314_v30 = vpop.eup %3313  ;;  %v2171_v20 = vadd.f32 1.0, %v3312_v25  ;;  %v2186_v50 = vmul.f32 %v2170_v56, %v2122_v57  ;;  %p3421_p8 = pnand %p3420_p7, %p3414_p4 }
 0x87c   :  { %2495 = vmatprep.mubr.bf16.mxu0 %v2193_v9  ;;  %v3316_v46 = vpop.eup %3315  ;;  %v2172_v32 = vadd.f32 1.0, %v3314_v30  ;;  %v2185_v48 = vmul.f32 %v2169_v61, %v2121_v27 }
 0x87d   :  { %2544 = vmatprep.mubr.bf16.mxu1 %v2195_v58  ;;  %2496 = vmatmul.mubr.bf16.vlgmr.msra.gmra.mrb[52].mxu0 %v2192_v11  ;;  %v3318_v35 = vpop.eup %3317  ;;  %v2174_v15 = vadd.f32 1.0, %v3316_v46  ;;  %v2187_v19 = vmul.f32 %v2171_v20, %v2123_v10 }
 0x87e   :  { %2545 = vmatmul.mubr.bf16.vlgmr.msra.gmra.mrb[44].mxu1 %v2194_v42  ;;  %v2188_v16 = vmul.f32 %v2172_v32, %v2124_v63  ;;  %v2173_v44 = vadd.f32 1.0, %v3318_v35  ;;  %v3320_v6 = vpop.eup %3319 }
 0x87f   :  { %v2190_v7 = vmul.f32 %v2174_v15, %v2126_v8  ;;  %v2175_v51 = vadd.f32 1.0, %v3320_v6 }
 0x880   :  { %v2189_v4 = vmul.f32 %v2173_v44, %v2125_v41  ;;  %v2196_v43 = vpack.c.bf16 %v2188_v16, %v2184_v40 }
 0x881   :  { %v2198_v0 = vpack.c.bf16 %v2190_v7, %v2186_v50  ;;  %v2191_v18 = vmul.f32 %v2175_v51, %v2127_v1 }
 0x882   :  { %v2197_v13 = vpack.c.bf16 %v2189_v4, %v2185_v48 }
 0x883   :  { %v2199_v53 = vpack.c.bf16 %v2191_v18, %v2187_v19 }
 0x884   :  { %2503 = vmatprep.mubr.bf16.mxu0 %v2197_v13 }
 0x885   :  { %2504 = vmatmul.mubr.bf16.gmra.mrb[56].mxu0 %v2196_v43  ;;  %2552 = vmatprep.mubr.bf16.mxu1 %v2199_v53 }
 0x886   :  { %2553 = vmatmul.mubr.bf16.gmra.mrb[48].mxu1 %v2198_v0 }
 0x950   :  { %v2774_v21 = vpop.f32.mrb[52].mxu0 }
 0x951   :  { %v2802_v14 = vpop.f32.mrb[44].mxu1  ;;  %v2775_v37 = vpop.f32.mrb[53].mxu0 }
 0x952   :  { %v2776_v47 = vadd.f32 %v2775_v37, %v2774_v21  ;;  %v2803_v17 = vpop.f32.mrb[45].mxu1  ;;  %v2777_v38 = vpop.f32.mrb[54].mxu0 }
 0x953   :  { %v2804_v22 = vadd.f32 %v2803_v17, %v2802_v14  ;;  %v2805_v49 = vpop.f32.mrb[46].mxu1  ;;  %v2778_v28 = vpop.f32.mrb[55].mxu0 }
 0x954   :  { %v2498_v31 = vadd.f32 %v2776_v47, %v2673_v59  ;;  %v2779_v24 = vadd.f32 %v2778_v28, %v2777_v38  ;;  %v2806_v33 = vpop.f32.mrb[47].mxu1 }
 0x955   :  { %v2807_v55 = vadd.f32 %v2806_v33, %v2805_v49 }
 0x956   :  { %v2547_v36 = vadd.f32 %v2804_v22, %v2498_v31  ;;  %v2501_v23 = vadd.f32 %v2779_v24, %v2673_v59 }
 0x958   :  { %v2561_v26 = vadd.f32 %v2547_v36, %v4004_v62  ;;  %v2550_v52 = vadd.f32 %v2807_v55, %v2501_v23  ;;  %v2780_v11 = vpop.f32.mrb[56].mxu0 }
 0x959   :  { %v2781_v39 = vpop.f32.mrb[57].mxu0  ;;  %v2808_v60 = vpop.f32.mrb[48].mxu1 }
 0x95a   :  { %2565 = vst [vmem:[#allocation10] sm:$0xff] %v2561_v26  ;;  %v2562_v5 = vadd.f32 %v2550_v52, %v4006_v12  ;;  %v2782_v42 = vadd.f32 %v2781_v39, %v2780_v11  ;;  %v2783_v2 = vpop.f32.mrb[58].mxu0  ;;  %v2809_v45 = vpop.f32.mrb[49].mxu1 }
 0x95b   :  { %v2784_v9 = vpop.f32.mrb[59].mxu0  ;;  %v2810_v29 = vadd.f32 %v2809_v45, %v2808_v60  ;;  %v2811_v58 = vpop.f32.mrb[50].mxu1 }
 0x95c   :  { %2566 = vst [vmem:[#allocation10 + $0x8] sm:$0xff] %v2562_v5  ;;  %v2506_v25 = vadd.f32 %v2782_v42, %v2673_v59  ;;  %v2785_v30 = vadd.f32 %v2784_v9, %v2783_v2  ;;  %v2812_v54 = vpop.f32.mrb[51].mxu1 }
 0x95d   :  { %v2813_v62 = vadd.f32 %v2812_v54, %v2811_v58 }
 0x95e   :  { %v2555_v56 = vadd.f32 %v2810_v29, %v2506_v25  ;;  %v2509_v46 = vadd.f32 %v2785_v30, %v2673_v59 }
 0x960   :  { %v2563_v57 = vadd.f32 %v2555_v56, %v4019_v3  ;;  %v2558_v12 = vadd.f32 %v2813_v62, %v2509_v46 }
 0x962   :  { %2567 = vst [vmem:[#allocation10 + $0x10] sm:$0xff] %v2563_v57  ;;  %v2564_v61 = vadd.f32 %v2558_v12, %v4012_v34 }
 0x964   :  { %2568 = vst [vmem:[#allocation10 + $0x18] sm:$0xff] %v2564_v61 }
 0x965   :  { %3424 = shalt.err (!%p3421_p8)
}
 0x966   :  { %s3425_s18 = scalar_lea.hbm %s4117_s13, 512 }
 0x967   :  { %p3426_p9 = scmp.ne.s32.totalorder %s4117_s13, %s3425_s18  ;;  %p3429_p10 = scmp.lt.u32.totalorder %s3425_s18, %s4117_s13 }
 0x969   :  { %p3431_p11 = pnand %p3429_p10, %p3426_p9 }
 0x96b   :  { %3434 = shalt.err (!%p3431_p11)
}
 0x96c   :  { %2580 = dma.vmem_to_hbm [thread:$0]  %s2575_s14, 512, %s4117_s13, [#allocation4], %s3447_s3, %s3447_s3, %s3448_s26  }
 0x96d   :  { %3441 = dma.done.wait [#allocation4], 512  }
 0x96e   :  { %3442 = vsyncadd [#allocation4], 4294966784 }
 0x96f   :  { %2584 = vsyncpa [#allocation3], 1 }
 0x970   :  { %2585 = vsyncpa [#allocation6], 1 }
 0x971   :  { %2586 = vsyncpa [#allocation9], 1 }
 0x972   :  { %2587 = vsyncpa [#allocation4], 1 }

</bundles_post_ra>
